<compile_context>
chip_gen: v7x
topology: tpu7x:2x2x1
jax: 0.10.0
libtpu: 0.0.40
codegen_flags: <defaults>
</compile_context>

<pallas_src>
import jax
import jax.numpy as jnp
from jax.experimental import pallas as pl
from jax.experimental.pallas import tpu as pltpu


# ----------------------------------------------------------------------------
# Shared LSTM cell math (float32 state, bf16 weights already applied upstream).
# ----------------------------------------------------------------------------
def _lstm_cell(gates, c_prev, h_size):
    # PyTorch LSTM gate layout along the 4H axis: [i, f, g, o].
    i = jax.nn.sigmoid(gates[:, 0 * h_size:1 * h_size])
    f = jax.nn.sigmoid(gates[:, 1 * h_size:2 * h_size])
    g = jnp.tanh(gates[:, 2 * h_size:3 * h_size])
    o = jax.nn.sigmoid(gates[:, 3 * h_size:4 * h_size])
    c = f * c_prev + i * g
    h = o * jnp.tanh(c)
    return h, c


# ----------------------------------------------------------------------------
# Kernel 1: one BiLSTM layer, both directions in one pallas_call.
# grid=(2,) over the direction axis; each grid instance runs the full time
# recurrence in-kernel and writes its half of the (T, B, 2H) output.
# ----------------------------------------------------------------------------
def _bilstm_seq_kernel(gx_ref, whh_ref, o_ref):
    # gx_ref : (T, B, 4H) f32  precomputed x @ W_ih + b for this direction
    #                          (natural time order; backward indexes reversed)
    # whh_ref: (H, 4H)    bf16 recurrent weights for this direction
    # o_ref  : (T, B, H)  f32  this direction's half of the layer output
    d = pl.program_id(0)                       # 0 = forward, 1 = backward
    T, B, H = o_ref.shape
    whh = whh_ref[...]

    def step(s, carry):
        h, c = carry
        row = d * (T - 1) + (1 - 2 * d) * s    # s if forward, T-1-s if backward
        gates = gx_ref[row] + jnp.dot(h.astype(jnp.bfloat16), whh,
                                      preferred_element_type=jnp.float32)
        h, c = _lstm_cell(gates, c, H)
        o_ref[row] = h
        return h, c

    zeros = jnp.zeros((B, H), jnp.float32)
    jax.lax.fori_loop(0, T, step, (zeros, zeros), unroll=True)


def bilstm_layer(x, p):
    """One bidirectional LSTM layer.

    x: (T, B, Din) float32, time-major.
    p: {'wih': (2, Din, 4H) bf16, 'whh': (2, H, 4H) bf16, 'b': (2, 4H) f32}
    returns (T, B, 2H) float32: [fwd hidden | bwd hidden] at every time step.
    """
    T, B, _ = x.shape
    H = p["whh"].shape[1]
    # Hoisted input projection: one big MXU matmul per direction (time-independent).
    gx = jnp.einsum("tbd,zdh->ztbh", x.astype(jnp.bfloat16), p["wih"],
                    preferred_element_type=jnp.float32)
    gx = gx + p["b"][:, None, None, :]                        # (2, T, B, 4H) f32

    return pl.pallas_call(
        _bilstm_seq_kernel,
        out_shape=jax.ShapeDtypeStruct((T, B, 2 * H), jnp.float32),
        grid_spec=pltpu.PrefetchScalarGridSpec(
            num_scalar_prefetch=0,
            grid=(2,),                                        # direction axis
            in_specs=[
                pl.BlockSpec((None, T, B, 4 * H), lambda d: (d, 0, 0, 0)),
                pl.BlockSpec((None, H, 4 * H), lambda d: (d, 0, 0)),
            ],
            out_specs=pl.BlockSpec((T, B, H), lambda d: (0, 0, d)),
        ),
        compiler_params=pltpu.CompilerParams(
            dimension_semantics=("parallel",)),               # fwd/bwd independent
    )(gx, p["whh"])


# ----------------------------------------------------------------------------
# Kernel 2: CharLSTM — both directions, final hidden states only.
# ----------------------------------------------------------------------------
def _bilstm_final_kernel(gx_ref, whh_ref, o_ref):
    # gx_ref : (L, N, 4Hc) f32, whh_ref: (Hc, 4Hc) bf16, o_ref: (N, Hc) f32
    d = pl.program_id(0)
    L, N, _ = gx_ref.shape
    Hc = o_ref.shape[-1]
    whh = whh_ref[...]

    def step(s, carry):
        h, c = carry
        row = d * (L - 1) + (1 - 2 * d) * s
        gates = gx_ref[row] + jnp.dot(h.astype(jnp.bfloat16), whh,
                                      preferred_element_type=jnp.float32)
        return _lstm_cell(gates, c, Hc)

    zeros = jnp.zeros((N, Hc), jnp.float32)
    h, _ = jax.lax.fori_loop(0, L, step, (zeros, zeros), unroll=True)
    o_ref[...] = h                                            # final state only


def char_bilstm_final(gx, whh):
    """gx: (2, L, N, 4Hc) f32, whh: (2, Hc, 4Hc) bf16 -> (2, N, Hc) f32."""
    _, L, N, G = gx.shape
    Hc = G // 4
    return pl.pallas_call(
        _bilstm_final_kernel,
        out_shape=jax.ShapeDtypeStruct((2, N, Hc), jnp.float32),
        grid_spec=pltpu.PrefetchScalarGridSpec(
            num_scalar_prefetch=0,
            grid=(2,),
            in_specs=[
                pl.BlockSpec((None, L, N, G), lambda d: (d, 0, 0, 0)),
                pl.BlockSpec((None, Hc, G), lambda d: (d, 0, 0)),
            ],
            out_specs=pl.BlockSpec((None, N, Hc), lambda d: (d, 0, 0)),
        ),
        compiler_params=pltpu.CompilerParams(
            dimension_semantics=("parallel",)),
    )(gx, whh)


# ----------------------------------------------------------------------------
# Parameter initialization (deterministic, synthetic).
# Weights for MXU matmuls are stored in bf16; biases stay f32.
# ----------------------------------------------------------------------------
def _bilstm_params(key, d_in, h, scale=0.1):
    k1, k2, k3 = jax.random.split(key, 3)
    return {
        "wih": (scale * jax.random.normal(k1, (2, d_in, 4 * h), jnp.float32)
                ).astype(jnp.bfloat16),
        "whh": (scale * jax.random.normal(k2, (2, h, 4 * h), jnp.float32)
                ).astype(jnp.bfloat16),
        "b": scale * jax.random.normal(k3, (2, 4 * h), jnp.float32),
    }


def init_params(key, *, n_words, n_chars, n_embed, n_feat_embed, n_char_embed,
                n_char_hidden, n_lstm_hidden, n_lstm_layers):
    keys = jax.random.split(key, 3 + n_lstm_layers)
    params = {}
    params["word_embed"] = 0.1 * jax.random.normal(
        keys[0], (n_words, n_embed), jnp.float32)
    params["char_embed"] = 0.1 * jax.random.normal(
        keys[1], (n_chars, n_char_embed), jnp.float32)

    hc = n_char_hidden // 2          # per-direction char LSTM hidden size
    params["char_lstm"] = _bilstm_params(keys[2], n_char_embed, hc)

    n_input = n_embed + n_feat_embed
    layers = []
    for l in range(n_lstm_layers):
        d_in = n_input if l == 0 else 2 * n_lstm_hidden
        layers.append(_bilstm_params(keys[3 + l], d_in, n_lstm_hidden))
    params["lstm_layers"] = layers
    return params


# ----------------------------------------------------------------------------
# Model.encode forward (eval mode).
# ----------------------------------------------------------------------------
def model_encode(params, words, chars):
    """words: (B, S) int32, chars: (B, S, L) int32 -> (B, S, 2*n_lstm_hidden)."""
    # ---- Model.embed ----
    word_e = jnp.take(params["word_embed"], words, axis=0)        # (B, S, E)

    # CharLSTM: char embedding + BiLSTM over char positions, final fwd/bwd
    # hidden states concatenated; projection is nn.Identity here.
    char_e = jnp.take(params["char_embed"], chars, axis=0)        # (B, S, L, Ec)
    B, S, L, Ec = char_e.shape
    cp = params["char_lstm"]
    Hc = cp["whh"].shape[1]
    ce = char_e.reshape(B * S, L, Ec)                             # (N, L, Ec)
    gx_c = jnp.einsum("nlc,zch->zlnh", ce.astype(jnp.bfloat16), cp["wih"],
                      preferred_element_type=jnp.float32)
    gx_c = gx_c + cp["b"][:, None, None, :]                       # (2, L, N, 4Hc)
    hfin = char_bilstm_final(gx_c, cp["whh"])                     # (2, N, Hc)
    char_feat = jnp.concatenate([hfin[0], hfin[1]], axis=-1)      # (N, 2Hc)
    char_feat = char_feat.reshape(B, S, 2 * Hc)

    # IndependentDropout -> identity in eval mode.
    embed = jnp.concatenate([word_e, char_feat], axis=-1)         # (B, S, n_input)

    # ---- VariationalLSTM encoder (3-layer BiLSTM, eval mode) ----
    x = jnp.transpose(embed, (1, 0, 2))                           # time-major (S,B,D)
    for lp in params["lstm_layers"]:
        x = bilstm_layer(x, lp)                                   # (S, B, 2H)

    # SharedDropout -> identity in eval mode.
    return jnp.transpose(x, (1, 0, 2))                            # (B, S, 2H)


# ----------------------------------------------------------------------------
if __name__ == "__main__":
    # Small, module-consistent hyperparameters.
    n_words, n_chars = 100, 30
    n_embed, n_feat_embed = 32, 32
    n_char_embed, n_char_hidden = 16, 32
    n_lstm_hidden, n_lstm_layers = 128, 3     # H=128 -> 128-lane aligned gates
    B, S, L = 2, 8, 4                         # batch, seq length, chars per word

    key = jax.random.PRNGKey(0)
    kp, kw, kc = jax.random.split(key, 3)

    params = init_params(
        kp, n_words=n_words, n_chars=n_chars, n_embed=n_embed,
        n_feat_embed=n_feat_embed, n_char_embed=n_char_embed,
        n_char_hidden=n_char_hidden, n_lstm_hidden=n_lstm_hidden,
        n_lstm_layers=n_lstm_layers)

    # No pad tokens (index 0 excluded) so the pack/pad round-trip is identity.
    words = jax.random.randint(kw, (B, S), 1, n_words, dtype=jnp.int32)
    chars = jax.random.randint(kc, (B, S, L), 1, n_chars, dtype=jnp.int32)

    out = jax.jit(model_encode)(params, words, chars)
    out = jax.block_until_ready(out)
    assert out.shape == (B, S, 2 * n_lstm_hidden), out.shape
    assert out.dtype == jnp.float32
    print("KERNEL_OK")
</pallas_src>

<mosaic_0001>
module attributes {stable_mosaic.version = 11 : i64} {
  func.func @_bilstm_final_kernel(%arg0: i32, %arg1: memref<1x4x16x64xf32, #tpu.memory_space<vmem>>, %arg2: memref<1x16x64xbf16, #tpu.memory_space<vmem>>, %arg3: memref<1x16x16xf32, #tpu.memory_space<vmem>>) attributes {dimension_semantics = [#tpu.dimension_semantics<parallel>], iteration_bounds = array<i64: 2>, scalar_prefetch = 0 : i64, scratch_operands = 0 : i64, tpu.core_type = #tpu.core_type<tc>, window_params = [{transform_indices = @transform_0, window_bounds = array<i64: 1, 4, 16, 64>}, {transform_indices = @transform_1, window_bounds = array<i64: 1, 16, 64>}, {transform_indices = @transform_2, window_bounds = array<i64: 1, 16, 16>}]} {
    %c0 = arith.constant 0 : index
    %c0_0 = arith.constant 0 : index
    %c0_1 = arith.constant 0 : index
    %0 = vector.load %arg2[%c0, %c0_0, %c0_1] : memref<1x16x64xbf16, #tpu.memory_space<vmem>>, vector<1x16x64xbf16>
    %1 = vector.shape_cast %0 : vector<1x16x64xbf16> to vector<16x64xbf16>
    %cst = arith.constant 0.000000e+00 : f32
    %2 = vector.broadcast %cst : f32 to vector<16x16xf32>
    %c0_i32 = arith.constant 0 : i32
    %c3_i32 = arith.constant 3 : i32
    %3 = arith.muli %arg0, %c3_i32 : i32
    %c2_i32 = arith.constant 2 : i32
    %4 = arith.muli %c2_i32, %arg0 : i32
    %c1_i32 = arith.constant 1 : i32
    %5 = arith.subi %c1_i32, %4 : i32
    %6 = arith.muli %5, %c0_i32 : i32
    %7 = arith.addi %3, %6 : i32
    %c0_2 = arith.constant 0 : index
    %8 = arith.index_cast %7 : i32 to index
    %c0_3 = arith.constant 0 : index
    %c0_4 = arith.constant 0 : index
    %9 = vector.load %arg1[%c0_2, %8, %c0_3, %c0_4] : memref<1x4x16x64xf32, #tpu.memory_space<vmem>>, vector<1x1x16x64xf32>
    %10 = vector.shape_cast %9 : vector<1x1x16x64xf32> to vector<16x64xf32>
    %11 = arith.truncf %2 : vector<16x16xf32> to vector<16x16xbf16>
    %cst_5 = arith.constant dense<0.000000e+00> : vector<16x64xf32>
    %12 = tpu.matmul %11, %1, %cst_5 {dimension_numbers = #tpu.dot_dimension_numbers<[1], [0], [0], [1], [0, 0, 1, 1], [], []>} : vector<16x16xbf16>, vector<16x64xbf16>, vector<16x64xf32> -> vector<16x64xf32>
    %13 = arith.addf %10, %12 : vector<16x64xf32>
    %14 = vector.extract_strided_slice %13 {offsets = [0, 0], sizes = [16, 16], strides = [1, 1]} : vector<16x64xf32> to vector<16x16xf32>
    %15 = arith.negf %14 : vector<16x16xf32>
    %16 = math.exp %15 : vector<16x16xf32>
    %cst_6 = arith.constant 1.000000e+00 : f32
    %17 = vector.broadcast %cst_6 : f32 to vector<16x16xf32>
    %18 = arith.addf %17, %16 : vector<16x16xf32>
    %19 = arith.divf %17, %18 : vector<16x16xf32>
    %20 = vector.extract_strided_slice %13 {offsets = [0, 16], sizes = [16, 16], strides = [1, 1]} : vector<16x64xf32> to vector<16x16xf32>
    %21 = arith.negf %20 : vector<16x16xf32>
    %22 = math.exp %21 : vector<16x16xf32>
    %cst_7 = arith.constant 1.000000e+00 : f32
    %23 = vector.broadcast %cst_7 : f32 to vector<16x16xf32>
    %24 = arith.addf %23, %22 : vector<16x16xf32>
    %25 = arith.divf %23, %24 : vector<16x16xf32>
    %26 = vector.extract_strided_slice %13 {offsets = [0, 32], sizes = [16, 16], strides = [1, 1]} : vector<16x64xf32> to vector<16x16xf32>
    %27 = math.tanh %26 : vector<16x16xf32>
    %28 = vector.extract_strided_slice %13 {offsets = [0, 48], sizes = [16, 16], strides = [1, 1]} : vector<16x64xf32> to vector<16x16xf32>
    %29 = arith.negf %28 : vector<16x16xf32>
    %30 = math.exp %29 : vector<16x16xf32>
    %cst_8 = arith.constant 1.000000e+00 : f32
    %31 = vector.broadcast %cst_8 : f32 to vector<16x16xf32>
    %32 = arith.addf %31, %30 : vector<16x16xf32>
    %33 = arith.divf %31, %32 : vector<16x16xf32>
    %34 = arith.mulf %25, %2 : vector<16x16xf32>
    %35 = arith.mulf %19, %27 : vector<16x16xf32>
    %36 = arith.addf %34, %35 : vector<16x16xf32>
    %37 = math.tanh %36 : vector<16x16xf32>
    %38 = arith.mulf %33, %37 : vector<16x16xf32>
    %c1_i32_9 = arith.constant 1 : i32
    %c3_i32_10 = arith.constant 3 : i32
    %39 = arith.muli %arg0, %c3_i32_10 : i32
    %c2_i32_11 = arith.constant 2 : i32
    %40 = arith.muli %c2_i32_11, %arg0 : i32
    %c1_i32_12 = arith.constant 1 : i32
    %41 = arith.subi %c1_i32_12, %40 : i32
    %42 = arith.muli %41, %c1_i32_9 : i32
    %43 = arith.addi %39, %42 : i32
    %c0_13 = arith.constant 0 : index
    %44 = arith.index_cast %43 : i32 to index
    %c0_14 = arith.constant 0 : index
    %c0_15 = arith.constant 0 : index
    %45 = vector.load %arg1[%c0_13, %44, %c0_14, %c0_15] : memref<1x4x16x64xf32, #tpu.memory_space<vmem>>, vector<1x1x16x64xf32>
    %46 = vector.shape_cast %45 : vector<1x1x16x64xf32> to vector<16x64xf32>
    %47 = arith.truncf %38 : vector<16x16xf32> to vector<16x16xbf16>
    %cst_16 = arith.constant dense<0.000000e+00> : vector<16x64xf32>
    %48 = tpu.matmul %47, %1, %cst_16 {dimension_numbers = #tpu.dot_dimension_numbers<[1], [0], [0], [1], [0, 0, 1, 1], [], []>} : vector<16x16xbf16>, vector<16x64xbf16>, vector<16x64xf32> -> vector<16x64xf32>
    %49 = arith.addf %46, %48 : vector<16x64xf32>
    %50 = vector.extract_strided_slice %49 {offsets = [0, 0], sizes = [16, 16], strides = [1, 1]} : vector<16x64xf32> to vector<16x16xf32>
    %51 = arith.negf %50 : vector<16x16xf32>
    %52 = math.exp %51 : vector<16x16xf32>
    %cst_17 = arith.constant 1.000000e+00 : f32
    %53 = vector.broadcast %cst_17 : f32 to vector<16x16xf32>
    %54 = arith.addf %53, %52 : vector<16x16xf32>
    %55 = arith.divf %53, %54 : vector<16x16xf32>
    %56 = vector.extract_strided_slice %49 {offsets = [0, 16], sizes = [16, 16], strides = [1, 1]} : vector<16x64xf32> to vector<16x16xf32>
    %57 = arith.negf %56 : vector<16x16xf32>
    %58 = math.exp %57 : vector<16x16xf32>
    %cst_18 = arith.constant 1.000000e+00 : f32
    %59 = vector.broadcast %cst_18 : f32 to vector<16x16xf32>
    %60 = arith.addf %59, %58 : vector<16x16xf32>
    %61 = arith.divf %59, %60 : vector<16x16xf32>
    %62 = vector.extract_strided_slice %49 {offsets = [0, 32], sizes = [16, 16], strides = [1, 1]} : vector<16x64xf32> to vector<16x16xf32>
    %63 = math.tanh %62 : vector<16x16xf32>
    %64 = vector.extract_strided_slice %49 {offsets = [0, 48], sizes = [16, 16], strides = [1, 1]} : vector<16x64xf32> to vector<16x16xf32>
    %65 = arith.negf %64 : vector<16x16xf32>
    %66 = math.exp %65 : vector<16x16xf32>
    %cst_19 = arith.constant 1.000000e+00 : f32
    %67 = vector.broadcast %cst_19 : f32 to vector<16x16xf32>
    %68 = arith.addf %67, %66 : vector<16x16xf32>
    %69 = arith.divf %67, %68 : vector<16x16xf32>
    %70 = arith.mulf %61, %36 : vector<16x16xf32>
    %71 = arith.mulf %55, %63 : vector<16x16xf32>
    %72 = arith.addf %70, %71 : vector<16x16xf32>
    %73 = math.tanh %72 : vector<16x16xf32>
    %74 = arith.mulf %69, %73 : vector<16x16xf32>
    %c2_i32_20 = arith.constant 2 : i32
    %c3_i32_21 = arith.constant 3 : i32
    %75 = arith.muli %arg0, %c3_i32_21 : i32
    %c2_i32_22 = arith.constant 2 : i32
    %76 = arith.muli %c2_i32_22, %arg0 : i32
    %c1_i32_23 = arith.constant 1 : i32
    %77 = arith.subi %c1_i32_23, %76 : i32
    %78 = arith.muli %77, %c2_i32_20 : i32
    %79 = arith.addi %75, %78 : i32
    %c0_24 = arith.constant 0 : index
    %80 = arith.index_cast %79 : i32 to index
    %c0_25 = arith.constant 0 : index
    %c0_26 = arith.constant 0 : index
    %81 = vector.load %arg1[%c0_24, %80, %c0_25, %c0_26] : memref<1x4x16x64xf32, #tpu.memory_space<vmem>>, vector<1x1x16x64xf32>
    %82 = vector.shape_cast %81 : vector<1x1x16x64xf32> to vector<16x64xf32>
    %83 = arith.truncf %74 : vector<16x16xf32> to vector<16x16xbf16>
    %cst_27 = arith.constant dense<0.000000e+00> : vector<16x64xf32>
    %84 = tpu.matmul %83, %1, %cst_27 {dimension_numbers = #tpu.dot_dimension_numbers<[1], [0], [0], [1], [0, 0, 1, 1], [], []>} : vector<16x16xbf16>, vector<16x64xbf16>, vector<16x64xf32> -> vector<16x64xf32>
    %85 = arith.addf %82, %84 : vector<16x64xf32>
    %86 = vector.extract_strided_slice %85 {offsets = [0, 0], sizes = [16, 16], strides = [1, 1]} : vector<16x64xf32> to vector<16x16xf32>
    %87 = arith.negf %86 : vector<16x16xf32>
    %88 = math.exp %87 : vector<16x16xf32>
    %cst_28 = arith.constant 1.000000e+00 : f32
    %89 = vector.broadcast %cst_28 : f32 to vector<16x16xf32>
    %90 = arith.addf %89, %88 : vector<16x16xf32>
    %91 = arith.divf %89, %90 : vector<16x16xf32>
    %92 = vector.extract_strided_slice %85 {offsets = [0, 16], sizes = [16, 16], strides = [1, 1]} : vector<16x64xf32> to vector<16x16xf32>
    %93 = arith.negf %92 : vector<16x16xf32>
    %94 = math.exp %93 : vector<16x16xf32>
    %cst_29 = arith.constant 1.000000e+00 : f32
    %95 = vector.broadcast %cst_29 : f32 to vector<16x16xf32>
    %96 = arith.addf %95, %94 : vector<16x16xf32>
    %97 = arith.divf %95, %96 : vector<16x16xf32>
    %98 = vector.extract_strided_slice %85 {offsets = [0, 32], sizes = [16, 16], strides = [1, 1]} : vector<16x64xf32> to vector<16x16xf32>
    %99 = math.tanh %98 : vector<16x16xf32>
    %100 = vector.extract_strided_slice %85 {offsets = [0, 48], sizes = [16, 16], strides = [1, 1]} : vector<16x64xf32> to vector<16x16xf32>
    %101 = arith.negf %100 : vector<16x16xf32>
    %102 = math.exp %101 : vector<16x16xf32>
    %cst_30 = arith.constant 1.000000e+00 : f32
    %103 = vector.broadcast %cst_30 : f32 to vector<16x16xf32>
    %104 = arith.addf %103, %102 : vector<16x16xf32>
    %105 = arith.divf %103, %104 : vector<16x16xf32>
    %106 = arith.mulf %97, %72 : vector<16x16xf32>
    %107 = arith.mulf %91, %99 : vector<16x16xf32>
    %108 = arith.addf %106, %107 : vector<16x16xf32>
    %109 = math.tanh %108 : vector<16x16xf32>
    %110 = arith.mulf %105, %109 : vector<16x16xf32>
    %c3_i32_31 = arith.constant 3 : i32
    %c3_i32_32 = arith.constant 3 : i32
    %111 = arith.muli %arg0, %c3_i32_32 : i32
    %c2_i32_33 = arith.constant 2 : i32
    %112 = arith.muli %c2_i32_33, %arg0 : i32
    %c1_i32_34 = arith.constant 1 : i32
    %113 = arith.subi %c1_i32_34, %112 : i32
    %114 = arith.muli %113, %c3_i32_31 : i32
    %115 = arith.addi %111, %114 : i32
    %c0_35 = arith.constant 0 : index
    %116 = arith.index_cast %115 : i32 to index
    %c0_36 = arith.constant 0 : index
    %c0_37 = arith.constant 0 : index
    %117 = vector.load %arg1[%c0_35, %116, %c0_36, %c0_37] : memref<1x4x16x64xf32, #tpu.memory_space<vmem>>, vector<1x1x16x64xf32>
    %118 = vector.shape_cast %117 : vector<1x1x16x64xf32> to vector<16x64xf32>
    %119 = arith.truncf %110 : vector<16x16xf32> to vector<16x16xbf16>
    %cst_38 = arith.constant dense<0.000000e+00> : vector<16x64xf32>
    %120 = tpu.matmul %119, %1, %cst_38 {dimension_numbers = #tpu.dot_dimension_numbers<[1], [0], [0], [1], [0, 0, 1, 1], [], []>} : vector<16x16xbf16>, vector<16x64xbf16>, vector<16x64xf32> -> vector<16x64xf32>
    %121 = arith.addf %118, %120 : vector<16x64xf32>
    %122 = vector.extract_strided_slice %121 {offsets = [0, 0], sizes = [16, 16], strides = [1, 1]} : vector<16x64xf32> to vector<16x16xf32>
    %123 = arith.negf %122 : vector<16x16xf32>
    %124 = math.exp %123 : vector<16x16xf32>
    %cst_39 = arith.constant 1.000000e+00 : f32
    %125 = vector.broadcast %cst_39 : f32 to vector<16x16xf32>
    %126 = arith.addf %125, %124 : vector<16x16xf32>
    %127 = arith.divf %125, %126 : vector<16x16xf32>
    %128 = vector.extract_strided_slice %121 {offsets = [0, 16], sizes = [16, 16], strides = [1, 1]} : vector<16x64xf32> to vector<16x16xf32>
    %129 = arith.negf %128 : vector<16x16xf32>
    %130 = math.exp %129 : vector<16x16xf32>
    %cst_40 = arith.constant 1.000000e+00 : f32
    %131 = vector.broadcast %cst_40 : f32 to vector<16x16xf32>
    %132 = arith.addf %131, %130 : vector<16x16xf32>
    %133 = arith.divf %131, %132 : vector<16x16xf32>
    %134 = vector.extract_strided_slice %121 {offsets = [0, 32], sizes = [16, 16], strides = [1, 1]} : vector<16x64xf32> to vector<16x16xf32>
    %135 = math.tanh %134 : vector<16x16xf32>
    %136 = vector.extract_strided_slice %121 {offsets = [0, 48], sizes = [16, 16], strides = [1, 1]} : vector<16x64xf32> to vector<16x16xf32>
    %137 = arith.negf %136 : vector<16x16xf32>
    %138 = math.exp %137 : vector<16x16xf32>
    %cst_41 = arith.constant 1.000000e+00 : f32
    %139 = vector.broadcast %cst_41 : f32 to vector<16x16xf32>
    %140 = arith.addf %139, %138 : vector<16x16xf32>
    %141 = arith.divf %139, %140 : vector<16x16xf32>
    %142 = arith.mulf %133, %108 : vector<16x16xf32>
    %143 = arith.mulf %127, %135 : vector<16x16xf32>
    %144 = arith.addf %142, %143 : vector<16x16xf32>
    %145 = math.tanh %144 : vector<16x16xf32>
    %146 = arith.mulf %141, %145 : vector<16x16xf32>
    %c4_i32 = arith.constant 4 : i32
    %c0_42 = arith.constant 0 : index
    %c0_43 = arith.constant 0 : index
    %c0_44 = arith.constant 0 : index
    %147 = vector.load %arg3[%c0_42, %c0_43, %c0_44] : memref<1x16x16xf32, #tpu.memory_space<vmem>>, vector<1x16x16xf32>
    %148 = vector.shape_cast %147 : vector<1x16x16xf32> to vector<16x16xf32>
    %149 = vector.shape_cast %146 : vector<16x16xf32> to vector<1x16x16xf32>
    tpu.vector_store %arg3[%c0_42, %c0_43, %c0_44], %149 {strides = array<i32>} : memref<1x16x16xf32, #tpu.memory_space<vmem>>, vector<1x16x16xf32>,
    return
  }
  func.func @transform_0(%arg0: i32) -> (i32, i32, i32, i32) {
    %c0_i32 = arith.constant 0 : i32
    %c0_i32_0 = arith.constant 0 : i32
    %c0_i32_1 = arith.constant 0 : i32
    %c0_i32_2 = arith.constant 0 : i32
    return %arg0, %c0_i32, %c0_i32_0, %c0_i32_1 : i32, i32, i32, i32
  }
  func.func @transform_1(%arg0: i32) -> (i32, i32, i32) {
    %c0_i32 = arith.constant 0 : i32
    %c0_i32_0 = arith.constant 0 : i32
    %c0_i32_1 = arith.constant 0 : i32
    return %arg0, %c0_i32, %c0_i32_0 : i32, i32, i32
  }
  func.func @transform_2(%arg0: i32) -> (i32, i32, i32) {
    %c0_i32 = arith.constant 0 : i32
    %c0_i32_0 = arith.constant 0 : i32
    %c0_i32_1 = arith.constant 0 : i32
    return %arg0, %c0_i32, %c0_i32_0 : i32, i32, i32
  }
}

module attributes {stable_mosaic.version = 11 : i64} {
  func.func @_bilstm_seq_kernel(%arg0: i32, %arg1: memref<1x8x2x512xf32, #tpu.memory_space<vmem>>, %arg2: memref<1x128x512xbf16, #tpu.memory_space<vmem>>, %arg3: memref<8x2x128xf32, #tpu.memory_space<vmem>>) attributes {dimension_semantics = [#tpu.dimension_semantics<parallel>], iteration_bounds = array<i64: 2>, scalar_prefetch = 0 : i64, scratch_operands = 0 : i64, tpu.core_type = #tpu.core_type<tc>, window_params = [{transform_indices = @transform_0, window_bounds = array<i64: 1, 8, 2, 512>}, {transform_indices = @transform_1, window_bounds = array<i64: 1, 128, 512>}, {transform_indices = @transform_2, window_bounds = array<i64: 8, 2, 128>}]} {
    %c0 = arith.constant 0 : index
    %c0_0 = arith.constant 0 : index
    %c0_1 = arith.constant 0 : index
    %0 = vector.load %arg2[%c0, %c0_0, %c0_1] : memref<1x128x512xbf16, #tpu.memory_space<vmem>>, vector<1x128x512xbf16>
    %1 = vector.shape_cast %0 : vector<1x128x512xbf16> to vector<128x512xbf16>
    %cst = arith.constant 0.000000e+00 : f32
    %2 = vector.broadcast %cst : f32 to vector<2x128xf32>
    %c0_i32 = arith.constant 0 : i32
    %c7_i32 = arith.constant 7 : i32
    %3 = arith.muli %arg0, %c7_i32 : i32
    %c2_i32 = arith.constant 2 : i32
    %4 = arith.muli %c2_i32, %arg0 : i32
    %c1_i32 = arith.constant 1 : i32
    %5 = arith.subi %c1_i32, %4 : i32
    %6 = arith.muli %5, %c0_i32 : i32
    %7 = arith.addi %3, %6 : i32
    %c0_2 = arith.constant 0 : index
    %8 = arith.index_cast %7 : i32 to index
    %c0_3 = arith.constant 0 : index
    %c0_4 = arith.constant 0 : index
    %9 = vector.load %arg1[%c0_2, %8, %c0_3, %c0_4] : memref<1x8x2x512xf32, #tpu.memory_space<vmem>>, vector<1x1x2x512xf32>
    %10 = vector.shape_cast %9 : vector<1x1x2x512xf32> to vector<2x512xf32>
    %11 = arith.truncf %2 : vector<2x128xf32> to vector<2x128xbf16>
    %cst_5 = arith.constant dense<0.000000e+00> : vector<2x512xf32>
    %12 = tpu.matmul %11, %1, %cst_5 {dimension_numbers = #tpu.dot_dimension_numbers<[1], [0], [0], [1], [0, 0, 1, 1], [], []>} : vector<2x128xbf16>, vector<128x512xbf16>, vector<2x512xf32> -> vector<2x512xf32>
    %13 = arith.addf %10, %12 : vector<2x512xf32>
    %14 = vector.extract_strided_slice %13 {offsets = [0, 0], sizes = [2, 128], strides = [1, 1]} : vector<2x512xf32> to vector<2x128xf32>
    %15 = arith.negf %14 : vector<2x128xf32>
    %16 = math.exp %15 : vector<2x128xf32>
    %cst_6 = arith.constant 1.000000e+00 : f32
    %17 = vector.broadcast %cst_6 : f32 to vector<2x128xf32>
    %18 = arith.addf %17, %16 : vector<2x128xf32>
    %19 = arith.divf %17, %18 : vector<2x128xf32>
    %20 = vector.extract_strided_slice %13 {offsets = [0, 128], sizes = [2, 128], strides = [1, 1]} : vector<2x512xf32> to vector<2x128xf32>
    %21 = arith.negf %20 : vector<2x128xf32>
    %22 = math.exp %21 : vector<2x128xf32>
    %cst_7 = arith.constant 1.000000e+00 : f32
    %23 = vector.broadcast %cst_7 : f32 to vector<2x128xf32>
    %24 = arith.addf %23, %22 : vector<2x128xf32>
    %25 = arith.divf %23, %24 : vector<2x128xf32>
    %26 = vector.extract_strided_slice %13 {offsets = [0, 256], sizes = [2, 128], strides = [1, 1]} : vector<2x512xf32> to vector<2x128xf32>
    %27 = math.tanh %26 : vector<2x128xf32>
    %28 = vector.extract_strided_slice %13 {offsets = [0, 384], sizes = [2, 128], strides = [1, 1]} : vector<2x512xf32> to vector<2x128xf32>
    %29 = arith.negf %28 : vector<2x128xf32>
    %30 = math.exp %29 : vector<2x128xf32>
    %cst_8 = arith.constant 1.000000e+00 : f32
    %31 = vector.broadcast %cst_8 : f32 to vector<2x128xf32>
    %32 = arith.addf %31, %30 : vector<2x128xf32>
    %33 = arith.divf %31, %32 : vector<2x128xf32>
    %34 = arith.mulf %25, %2 : vector<2x128xf32>
    %35 = arith.mulf %19, %27 : vector<2x128xf32>
    %36 = arith.addf %34, %35 : vector<2x128xf32>
    %37 = math.tanh %36 : vector<2x128xf32>
    %38 = arith.mulf %33, %37 : vector<2x128xf32>
    %39 = arith.index_cast %7 : i32 to index
    %c0_9 = arith.constant 0 : index
    %c0_10 = arith.constant 0 : index
    %40 = vector.load %arg3[%39, %c0_9, %c0_10] : memref<8x2x128xf32, #tpu.memory_space<vmem>>, vector<1x2x128xf32>
    %41 = vector.shape_cast %40 : vector<1x2x128xf32> to vector<2x128xf32>
    %42 = vector.shape_cast %38 : vector<2x128xf32> to vector<1x2x128xf32>
    tpu.vector_store %arg3[%39, %c0_9, %c0_10], %42 {strides = array<i32>} : memref<8x2x128xf32, #tpu.memory_space<vmem>>, vector<1x2x128xf32>,
    %c1_i32_11 = arith.constant 1 : i32
    %c7_i32_12 = arith.constant 7 : i32
    %43 = arith.muli %arg0, %c7_i32_12 : i32
    %c2_i32_13 = arith.constant 2 : i32
    %44 = arith.muli %c2_i32_13, %arg0 : i32
    %c1_i32_14 = arith.constant 1 : i32
    %45 = arith.subi %c1_i32_14, %44 : i32
    %46 = arith.muli %45, %c1_i32_11 : i32
    %47 = arith.addi %43, %46 : i32
    %c0_15 = arith.constant 0 : index
    %48 = arith.index_cast %47 : i32 to index
    %c0_16 = arith.constant 0 : index
    %c0_17 = arith.constant 0 : index
    %49 = vector.load %arg1[%c0_15, %48, %c0_16, %c0_17] : memref<1x8x2x512xf32, #tpu.memory_space<vmem>>, vector<1x1x2x512xf32>
    %50 = vector.shape_cast %49 : vector<1x1x2x512xf32> to vector<2x512xf32>
    %51 = arith.truncf %38 : vector<2x128xf32> to vector<2x128xbf16>
    %cst_18 = arith.constant dense<0.000000e+00> : vector<2x512xf32>
    %52 = tpu.matmul %51, %1, %cst_18 {dimension_numbers = #tpu.dot_dimension_numbers<[1], [0], [0], [1], [0, 0, 1, 1], [], []>} : vector<2x128xbf16>, vector<128x512xbf16>, vector<2x512xf32> -> vector<2x512xf32>
    %53 = arith.addf %50, %52 : vector<2x512xf32>
    %54 = vector.extract_strided_slice %53 {offsets = [0, 0], sizes = [2, 128], strides = [1, 1]} : vector<2x512xf32> to vector<2x128xf32>
    %55 = arith.negf %54 : vector<2x128xf32>
    %56 = math.exp %55 : vector<2x128xf32>
    %cst_19 = arith.constant 1.000000e+00 : f32
    %57 = vector.broadcast %cst_19 : f32 to vector<2x128xf32>
    %58 = arith.addf %57, %56 : vector<2x128xf32>
    %59 = arith.divf %57, %58 : vector<2x128xf32>
    %60 = vector.extract_strided_slice %53 {offsets = [0, 128], sizes = [2, 128], strides = [1, 1]} : vector<2x512xf32> to vector<2x128xf32>
    %61 = arith.negf %60 : vector<2x128xf32>
    %62 = math.exp %61 : vector<2x128xf32>
    %cst_20 = arith.constant 1.000000e+00 : f32
    %63 = vector.broadcast %cst_20 : f32 to vector<2x128xf32>
    %64 = arith.addf %63, %62 : vector<2x128xf32>
    %65 = arith.divf %63, %64 : vector<2x128xf32>
    %66 = vector.extract_strided_slice %53 {offsets = [0, 256], sizes = [2, 128], strides = [1, 1]} : vector<2x512xf32> to vector<2x128xf32>
    %67 = math.tanh %66 : vector<2x128xf32>
    %68 = vector.extract_strided_slice %53 {offsets = [0, 384], sizes = [2, 128], strides = [1, 1]} : vector<2x512xf32> to vector<2x128xf32>
    %69 = arith.negf %68 : vector<2x128xf32>
    %70 = math.exp %69 : vector<2x128xf32>
    %cst_21 = arith.constant 1.000000e+00 : f32
    %71 = vector.broadcast %cst_21 : f32 to vector<2x128xf32>
    %72 = arith.addf %71, %70 : vector<2x128xf32>
    %73 = arith.divf %71, %72 : vector<2x128xf32>
    %74 = arith.mulf %65, %36 : vector<2x128xf32>
    %75 = arith.mulf %59, %67 : vector<2x128xf32>
    %76 = arith.addf %74, %75 : vector<2x128xf32>
    %77 = math.tanh %76 : vector<2x128xf32>
    %78 = arith.mulf %73, %77 : vector<2x128xf32>
    %79 = arith.index_cast %47 : i32 to index
    %c0_22 = arith.constant 0 : index
    %c0_23 = arith.constant 0 : index
    %80 = vector.load %arg3[%79, %c0_22, %c0_23] : memref<8x2x128xf32, #tpu.memory_space<vmem>>, vector<1x2x128xf32>
    %81 = vector.shape_cast %80 : vector<1x2x128xf32> to vector<2x128xf32>
    %82 = vector.shape_cast %78 : vector<2x128xf32> to vector<1x2x128xf32>
    tpu.vector_store %arg3[%79, %c0_22, %c0_23], %82 {strides = array<i32>} : memref<8x2x128xf32, #tpu.memory_space<vmem>>, vector<1x2x128xf32>,
    %c2_i32_24 = arith.constant 2 : i32
    %c7_i32_25 = arith.constant 7 : i32
    %83 = arith.muli %arg0, %c7_i32_25 : i32
    %c2_i32_26 = arith.constant 2 : i32
    %84 = arith.muli %c2_i32_26, %arg0 : i32
    %c1_i32_27 = arith.constant 1 : i32
    %85 = arith.subi %c1_i32_27, %84 : i32
    %86 = arith.muli %85, %c2_i32_24 : i32
    %87 = arith.addi %83, %86 : i32
    %c0_28 = arith.constant 0 : index
    %88 = arith.index_cast %87 : i32 to index
    %c0_29 = arith.constant 0 : index
    %c0_30 = arith.constant 0 : index
    %89 = vector.load %arg1[%c0_28, %88, %c0_29, %c0_30] : memref<1x8x2x512xf32, #tpu.memory_space<vmem>>, vector<1x1x2x512xf32>
    %90 = vector.shape_cast %89 : vector<1x1x2x512xf32> to vector<2x512xf32>
    %91 = arith.truncf %78 : vector<2x128xf32> to vector<2x128xbf16>
    %cst_31 = arith.constant dense<0.000000e+00> : vector<2x512xf32>
    %92 = tpu.matmul %91, %1, %cst_31 {dimension_numbers = #tpu.dot_dimension_numbers<[1], [0], [0], [1], [0, 0, 1, 1], [], []>} : vector<2x128xbf16>, vector<128x512xbf16>, vector<2x512xf32> -> vector<2x512xf32>
    %93 = arith.addf %90, %92 : vector<2x512xf32>
    %94 = vector.extract_strided_slice %93 {offsets = [0, 0], sizes = [2, 128], strides = [1, 1]} : vector<2x512xf32> to vector<2x128xf32>
    %95 = arith.negf %94 : vector<2x128xf32>
    %96 = math.exp %95 : vector<2x128xf32>
    %cst_32 = arith.constant 1.000000e+00 : f32
    %97 = vector.broadcast %cst_32 : f32 to vector<2x128xf32>
    %98 = arith.addf %97, %96 : vector<2x128xf32>
    %99 = arith.divf %97, %98 : vector<2x128xf32>
    %100 = vector.extract_strided_slice %93 {offsets = [0, 128], sizes = [2, 128], strides = [1, 1]} : vector<2x512xf32> to vector<2x128xf32>
    %101 = arith.negf %100 : vector<2x128xf32>
    %102 = math.exp %101 : vector<2x128xf32>
    %cst_33 = arith.constant 1.000000e+00 : f32
    %103 = vector.broadcast %cst_33 : f32 to vector<2x128xf32>
    %104 = arith.addf %103, %102 : vector<2x128xf32>
    %105 = arith.divf %103, %104 : vector<2x128xf32>
    %106 = vector.extract_strided_slice %93 {offsets = [0, 256], sizes = [2, 128], strides = [1, 1]} : vector<2x512xf32> to vector<2x128xf32>
    %107 = math.tanh %106 : vector<2x128xf32>
    %108 = vector.extract_strided_slice %93 {offsets = [0, 384], sizes = [2, 128], strides = [1, 1]} : vector<2x512xf32> to vector<2x128xf32>
    %109 = arith.negf %108 : vector<2x128xf32>
    %110 = math.exp %109 : vector<2x128xf32>
    %cst_34 = arith.constant 1.000000e+00 : f32
    %111 = vector.broadcast %cst_34 : f32 to vector<2x128xf32>
    %112 = arith.addf %111, %110 : vector<2x128xf32>
    %113 = arith.divf %111, %112 : vector<2x128xf32>
    %114 = arith.mulf %105, %76 : vector<2x128xf32>
    %115 = arith.mulf %99, %107 : vector<2x128xf32>
    %116 = arith.addf %114, %115 : vector<2x128xf32>
    %117 = math.tanh %116 : vector<2x128xf32>
    %118 = arith.mulf %113, %117 : vector<2x128xf32>
    %119 = arith.index_cast %87 : i32 to index
    %c0_35 = arith.constant 0 : index
    %c0_36 = arith.constant 0 : index
    %120 = vector.load %arg3[%119, %c0_35, %c0_36] : memref<8x2x128xf32, #tpu.memory_space<vmem>>, vector<1x2x128xf32>
    %121 = vector.shape_cast %120 : vector<1x2x128xf32> to vector<2x128xf32>
    %122 = vector.shape_cast %118 : vector<2x128xf32> to vector<1x2x128xf32>
    tpu.vector_store %arg3[%119, %c0_35, %c0_36], %122 {strides = array<i32>} : memref<8x2x128xf32, #tpu.memory_space<vmem>>, vector<1x2x128xf32>,
    %c3_i32 = arith.constant 3 : i32
    %c7_i32_37 = arith.constant 7 : i32
    %123 = arith.muli %arg0, %c7_i32_37 : i32
    %c2_i32_38 = arith.constant 2 : i32
    %124 = arith.muli %c2_i32_38, %arg0 : i32
    %c1_i32_39 = arith.constant 1 : i32
    %125 = arith.subi %c1_i32_39, %124 : i32
    %126 = arith.muli %125, %c3_i32 : i32
    %127 = arith.addi %123, %126 : i32
    %c0_40 = arith.constant 0 : index
    %128 = arith.index_cast %127 : i32 to index
    %c0_41 = arith.constant 0 : index
    %c0_42 = arith.constant 0 : index
    %129 = vector.load %arg1[%c0_40, %128, %c0_41, %c0_42] : memref<1x8x2x512xf32, #tpu.memory_space<vmem>>, vector<1x1x2x512xf32>
    %130 = vector.shape_cast %129 : vector<1x1x2x512xf32> to vector<2x512xf32>
    %131 = arith.truncf %118 : vector<2x128xf32> to vector<2x128xbf16>
    %cst_43 = arith.constant dense<0.000000e+00> : vector<2x512xf32>
    %132 = tpu.matmul %131, %1, %cst_43 {dimension_numbers = #tpu.dot_dimension_numbers<[1], [0], [0], [1], [0, 0, 1, 1], [], []>} : vector<2x128xbf16>, vector<128x512xbf16>, vector<2x512xf32> -> vector<2x512xf32>
    %133 = arith.addf %130, %132 : vector<2x512xf32>
    %134 = vector.extract_strided_slice %133 {offsets = [0, 0], sizes = [2, 128], strides = [1, 1]} : vector<2x512xf32> to vector<2x128xf32>
    %135 = arith.negf %134 : vector<2x128xf32>
    %136 = math.exp %135 : vector<2x128xf32>
    %cst_44 = arith.constant 1.000000e+00 : f32
    %137 = vector.broadcast %cst_44 : f32 to vector<2x128xf32>
    %138 = arith.addf %137, %136 : vector<2x128xf32>
    %139 = arith.divf %137, %138 : vector<2x128xf32>
    %140 = vector.extract_strided_slice %133 {offsets = [0, 128], sizes = [2, 128], strides = [1, 1]} : vector<2x512xf32> to vector<2x128xf32>
    %141 = arith.negf %140 : vector<2x128xf32>
    %142 = math.exp %141 : vector<2x128xf32>
    %cst_45 = arith.constant 1.000000e+00 : f32
    %143 = vector.broadcast %cst_45 : f32 to vector<2x128xf32>
    %144 = arith.addf %143, %142 : vector<2x128xf32>
    %145 = arith.divf %143, %144 : vector<2x128xf32>
    %146 = vector.extract_strided_slice %133 {offsets = [0, 256], sizes = [2, 128], strides = [1, 1]} : vector<2x512xf32> to vector<2x128xf32>
    %147 = math.tanh %146 : vector<2x128xf32>
    %148 = vector.extract_strided_slice %133 {offsets = [0, 384], sizes = [2, 128], strides = [1, 1]} : vector<2x512xf32> to vector<2x128xf32>
    %149 = arith.negf %148 : vector<2x128xf32>
    %150 = math.exp %149 : vector<2x128xf32>
    %cst_46 = arith.constant 1.000000e+00 : f32
    %151 = vector.broadcast %cst_46 : f32 to vector<2x128xf32>
    %152 = arith.addf %151, %150 : vector<2x128xf32>
    %153 = arith.divf %151, %152 : vector<2x128xf32>
    %154 = arith.mulf %145, %116 : vector<2x128xf32>
    %155 = arith.mulf %139, %147 : vector<2x128xf32>
    %156 = arith.addf %154, %155 : vector<2x128xf32>
    %157 = math.tanh %156 : vector<2x128xf32>
    %158 = arith.mulf %153, %157 : vector<2x128xf32>
    %159 = arith.index_cast %127 : i32 to index
    %c0_47 = arith.constant 0 : index
    %c0_48 = arith.constant 0 : index
    %160 = vector.load %arg3[%159, %c0_47, %c0_48] : memref<8x2x128xf32, #tpu.memory_space<vmem>>, vector<1x2x128xf32>
    %161 = vector.shape_cast %160 : vector<1x2x128xf32> to vector<2x128xf32>
    %162 = vector.shape_cast %158 : vector<2x128xf32> to vector<1x2x128xf32>
    tpu.vector_store %arg3[%159, %c0_47, %c0_48], %162 {strides = array<i32>} : memref<8x2x128xf32, #tpu.memory_space<vmem>>, vector<1x2x128xf32>,
    %c4_i32 = arith.constant 4 : i32
    %c7_i32_49 = arith.constant 7 : i32
    %163 = arith.muli %arg0, %c7_i32_49 : i32
    %c2_i32_50 = arith.constant 2 : i32
    %164 = arith.muli %c2_i32_50, %arg0 : i32
    %c1_i32_51 = arith.constant 1 : i32
    %165 = arith.subi %c1_i32_51, %164 : i32
    %166 = arith.muli %165, %c4_i32 : i32
    %167 = arith.addi %163, %166 : i32
    %c0_52 = arith.constant 0 : index
    %168 = arith.index_cast %167 : i32 to index
    %c0_53 = arith.constant 0 : index
    %c0_54 = arith.constant 0 : index
    %169 = vector.load %arg1[%c0_52, %168, %c0_53, %c0_54] : memref<1x8x2x512xf32, #tpu.memory_space<vmem>>, vector<1x1x2x512xf32>
    %170 = vector.shape_cast %169 : vector<1x1x2x512xf32> to vector<2x512xf32>
    %171 = arith.truncf %158 : vector<2x128xf32> to vector<2x128xbf16>
    %cst_55 = arith.constant dense<0.000000e+00> : vector<2x512xf32>
    %172 = tpu.matmul %171, %1, %cst_55 {dimension_numbers = #tpu.dot_dimension_numbers<[1], [0], [0], [1], [0, 0, 1, 1], [], []>} : vector<2x128xbf16>, vector<128x512xbf16>, vector<2x512xf32> -> vector<2x512xf32>
    %173 = arith.addf %170, %172 : vector<2x512xf32>
    %174 = vector.extract_strided_slice %173 {offsets = [0, 0], sizes = [2, 128], strides = [1, 1]} : vector<2x512xf32> to vector<2x128xf32>
    %175 = arith.negf %174 : vector<2x128xf32>
    %176 = math.exp %175 : vector<2x128xf32>
    %cst_56 = arith.constant 1.000000e+00 : f32
    %177 = vector.broadcast %cst_56 : f32 to vector<2x128xf32>
    %178 = arith.addf %177, %176 : vector<2x128xf32>
    %179 = arith.divf %177, %178 : vector<2x128xf32>
    %180 = vector.extract_strided_slice %173 {offsets = [0, 128], sizes = [2, 128], strides = [1, 1]} : vector<2x512xf32> to vector<2x128xf32>
    %181 = arith.negf %180 : vector<2x128xf32>
    %182 = math.exp %181 : vector<2x128xf32>
    %cst_57 = arith.constant 1.000000e+00 : f32
    %183 = vector.broadcast %cst_57 : f32 to vector<2x128xf32>
    %184 = arith.addf %183, %182 : vector<2x128xf32>
    %185 = arith.divf %183, %184 : vector<2x128xf32>
    %186 = vector.extract_strided_slice %173 {offsets = [0, 256], sizes = [2, 128], strides = [1, 1]} : vector<2x512xf32> to vector<2x128xf32>
    %187 = math.tanh %186 : vector<2x128xf32>
    %188 = vector.extract_strided_slice %173 {offsets = [0, 384], sizes = [2, 128], strides = [1, 1]} : vector<2x512xf32> to vector<2x128xf32>
    %189 = arith.negf %188 : vector<2x128xf32>
    %190 = math.exp %189 : vector<2x128xf32>
    %cst_58 = arith.constant 1.000000e+00 : f32
    %191 = vector.broadcast %cst_58 : f32 to vector<2x128xf32>
    %192 = arith.addf %191, %190 : vector<2x128xf32>
    %193 = arith.divf %191, %192 : vector<2x128xf32>
    %194 = arith.mulf %185, %156 : vector<2x128xf32>
    %195 = arith.mulf %179, %187 : vector<2x128xf32>
    %196 = arith.addf %194, %195 : vector<2x128xf32>
    %197 = math.tanh %196 : vector<2x128xf32>
    %198 = arith.mulf %193, %197 : vector<2x128xf32>
    %199 = arith.index_cast %167 : i32 to index
    %c0_59 = arith.constant 0 : index
    %c0_60 = arith.constant 0 : index
    %200 = vector.load %arg3[%199, %c0_59, %c0_60] : memref<8x2x128xf32, #tpu.memory_space<vmem>>, vector<1x2x128xf32>
    %201 = vector.shape_cast %200 : vector<1x2x128xf32> to vector<2x128xf32>
    %202 = vector.shape_cast %198 : vector<2x128xf32> to vector<1x2x128xf32>
    tpu.vector_store %arg3[%199, %c0_59, %c0_60], %202 {strides = array<i32>} : memref<8x2x128xf32, #tpu.memory_space<vmem>>, vector<1x2x128xf32>,
    %c5_i32 = arith.constant 5 : i32
    %c7_i32_61 = arith.constant 7 : i32
    %203 = arith.muli %arg0, %c7_i32_61 : i32
    %c2_i32_62 = arith.constant 2 : i32
    %204 = arith.muli %c2_i32_62, %arg0 : i32
    %c1_i32_63 = arith.constant 1 : i32
    %205 = arith.subi %c1_i32_63, %204 : i32
    %206 = arith.muli %205, %c5_i32 : i32
    %207 = arith.addi %203, %206 : i32
    %c0_64 = arith.constant 0 : index
    %208 = arith.index_cast %207 : i32 to index
    %c0_65 = arith.constant 0 : index
    %c0_66 = arith.constant 0 : index
    %209 = vector.load %arg1[%c0_64, %208, %c0_65, %c0_66] : memref<1x8x2x512xf32, #tpu.memory_space<vmem>>, vector<1x1x2x512xf32>
    %210 = vector.shape_cast %209 : vector<1x1x2x512xf32> to vector<2x512xf32>
    %211 = arith.truncf %198 : vector<2x128xf32> to vector<2x128xbf16>
    %cst_67 = arith.constant dense<0.000000e+00> : vector<2x512xf32>
    %212 = tpu.matmul %211, %1, %cst_67 {dimension_numbers = #tpu.dot_dimension_numbers<[1], [0], [0], [1], [0, 0, 1, 1], [], []>} : vector<2x128xbf16>, vector<128x512xbf16>, vector<2x512xf32> -> vector<2x512xf32>
    %213 = arith.addf %210, %212 : vector<2x512xf32>
    %214 = vector.extract_strided_slice %213 {offsets = [0, 0], sizes = [2, 128], strides = [1, 1]} : vector<2x512xf32> to vector<2x128xf32>
    %215 = arith.negf %214 : vector<2x128xf32>
    %216 = math.exp %215 : vector<2x128xf32>
    %cst_68 = arith.constant 1.000000e+00 : f32
    %217 = vector.broadcast %cst_68 : f32 to vector<2x128xf32>
    %218 = arith.addf %217, %216 : vector<2x128xf32>
    %219 = arith.divf %217, %218 : vector<2x128xf32>
    %220 = vector.extract_strided_slice %213 {offsets = [0, 128], sizes = [2, 128], strides = [1, 1]} : vector<2x512xf32> to vector<2x128xf32>
    %221 = arith.negf %220 : vector<2x128xf32>
    %222 = math.exp %221 : vector<2x128xf32>
    %cst_69 = arith.constant 1.000000e+00 : f32
    %223 = vector.broadcast %cst_69 : f32 to vector<2x128xf32>
    %224 = arith.addf %223, %222 : vector<2x128xf32>
    %225 = arith.divf %223, %224 : vector<2x128xf32>
    %226 = vector.extract_strided_slice %213 {offsets = [0, 256], sizes = [2, 128], strides = [1, 1]} : vector<2x512xf32> to vector<2x128xf32>
    %227 = math.tanh %226 : vector<2x128xf32>
    %228 = vector.extract_strided_slice %213 {offsets = [0, 384], sizes = [2, 128], strides = [1, 1]} : vector<2x512xf32> to vector<2x128xf32>
    %229 = arith.negf %228 : vector<2x128xf32>
    %230 = math.exp %229 : vector<2x128xf32>
    %cst_70 = arith.constant 1.000000e+00 : f32
    %231 = vector.broadcast %cst_70 : f32 to vector<2x128xf32>
    %232 = arith.addf %231, %230 : vector<2x128xf32>
    %233 = arith.divf %231, %232 : vector<2x128xf32>
    %234 = arith.mulf %225, %196 : vector<2x128xf32>
    %235 = arith.mulf %219, %227 : vector<2x128xf32>
    %236 = arith.addf %234, %235 : vector<2x128xf32>
    %237 = math.tanh %236 : vector<2x128xf32>
    %238 = arith.mulf %233, %237 : vector<2x128xf32>
    %239 = arith.index_cast %207 : i32 to index
    %c0_71 = arith.constant 0 : index
    %c0_72 = arith.constant 0 : index
    %240 = vector.load %arg3[%239, %c0_71, %c0_72] : memref<8x2x128xf32, #tpu.memory_space<vmem>>, vector<1x2x128xf32>
    %241 = vector.shape_cast %240 : vector<1x2x128xf32> to vector<2x128xf32>
    %242 = vector.shape_cast %238 : vector<2x128xf32> to vector<1x2x128xf32>
    tpu.vector_store %arg3[%239, %c0_71, %c0_72], %242 {strides = array<i32>} : memref<8x2x128xf32, #tpu.memory_space<vmem>>, vector<1x2x128xf32>,
    %c6_i32 = arith.constant 6 : i32
    %c7_i32_73 = arith.constant 7 : i32
    %243 = arith.muli %arg0, %c7_i32_73 : i32
    %c2_i32_74 = arith.constant 2 : i32
    %244 = arith.muli %c2_i32_74, %arg0 : i32
    %c1_i32_75 = arith.constant 1 : i32
    %245 = arith.subi %c1_i32_75, %244 : i32
    %246 = arith.muli %245, %c6_i32 : i32
    %247 = arith.addi %243, %246 : i32
    %c0_76 = arith.constant 0 : index
    %248 = arith.index_cast %247 : i32 to index
    %c0_77 = arith.constant 0 : index
    %c0_78 = arith.constant 0 : index
    %249 = vector.load %arg1[%c0_76, %248, %c0_77, %c0_78] : memref<1x8x2x512xf32, #tpu.memory_space<vmem>>, vector<1x1x2x512xf32>
    %250 = vector.shape_cast %249 : vector<1x1x2x512xf32> to vector<2x512xf32>
    %251 = arith.truncf %238 : vector<2x128xf32> to vector<2x128xbf16>
    %cst_79 = arith.constant dense<0.000000e+00> : vector<2x512xf32>
    %252 = tpu.matmul %251, %1, %cst_79 {dimension_numbers = #tpu.dot_dimension_numbers<[1], [0], [0], [1], [0, 0, 1, 1], [], []>} : vector<2x128xbf16>, vector<128x512xbf16>, vector<2x512xf32> -> vector<2x512xf32>
    %253 = arith.addf %250, %252 : vector<2x512xf32>
    %254 = vector.extract_strided_slice %253 {offsets = [0, 0], sizes = [2, 128], strides = [1, 1]} : vector<2x512xf32> to vector<2x128xf32>
    %255 = arith.negf %254 : vector<2x128xf32>
    %256 = math.exp %255 : vector<2x128xf32>
    %cst_80 = arith.constant 1.000000e+00 : f32
    %257 = vector.broadcast %cst_80 : f32 to vector<2x128xf32>
    %258 = arith.addf %257, %256 : vector<2x128xf32>
    %259 = arith.divf %257, %258 : vector<2x128xf32>
    %260 = vector.extract_strided_slice %253 {offsets = [0, 128], sizes = [2, 128], strides = [1, 1]} : vector<2x512xf32> to vector<2x128xf32>
    %261 = arith.negf %260 : vector<2x128xf32>
    %262 = math.exp %261 : vector<2x128xf32>
    %cst_81 = arith.constant 1.000000e+00 : f32
    %263 = vector.broadcast %cst_81 : f32 to vector<2x128xf32>
    %264 = arith.addf %263, %262 : vector<2x128xf32>
    %265 = arith.divf %263, %264 : vector<2x128xf32>
    %266 = vector.extract_strided_slice %253 {offsets = [0, 256], sizes = [2, 128], strides = [1, 1]} : vector<2x512xf32> to vector<2x128xf32>
    %267 = math.tanh %266 : vector<2x128xf32>
    %268 = vector.extract_strided_slice %253 {offsets = [0, 384], sizes = [2, 128], strides = [1, 1]} : vector<2x512xf32> to vector<2x128xf32>
    %269 = arith.negf %268 : vector<2x128xf32>
    %270 = math.exp %269 : vector<2x128xf32>
    %cst_82 = arith.constant 1.000000e+00 : f32
    %271 = vector.broadcast %cst_82 : f32 to vector<2x128xf32>
    %272 = arith.addf %271, %270 : vector<2x128xf32>
    %273 = arith.divf %271, %272 : vector<2x128xf32>
    %274 = arith.mulf %265, %236 : vector<2x128xf32>
    %275 = arith.mulf %259, %267 : vector<2x128xf32>
    %276 = arith.addf %274, %275 : vector<2x128xf32>
    %277 = math.tanh %276 : vector<2x128xf32>
    %278 = arith.mulf %273, %277 : vector<2x128xf32>
    %279 = arith.index_cast %247 : i32 to index
    %c0_83 = arith.constant 0 : index
    %c0_84 = arith.constant 0 : index
    %280 = vector.load %arg3[%279, %c0_83, %c0_84] : memref<8x2x128xf32, #tpu.memory_space<vmem>>, vector<1x2x128xf32>
    %281 = vector.shape_cast %280 : vector<1x2x128xf32> to vector<2x128xf32>
    %282 = vector.shape_cast %278 : vector<2x128xf32> to vector<1x2x128xf32>
    tpu.vector_store %arg3[%279, %c0_83, %c0_84], %282 {strides = array<i32>} : memref<8x2x128xf32, #tpu.memory_space<vmem>>, vector<1x2x128xf32>,
    %c7_i32_85 = arith.constant 7 : i32
    %c7_i32_86 = arith.constant 7 : i32
    %283 = arith.muli %arg0, %c7_i32_86 : i32
    %c2_i32_87 = arith.constant 2 : i32
    %284 = arith.muli %c2_i32_87, %arg0 : i32
    %c1_i32_88 = arith.constant 1 : i32
    %285 = arith.subi %c1_i32_88, %284 : i32
    %286 = arith.muli %285, %c7_i32_85 : i32
    %287 = arith.addi %283, %286 : i32
    %c0_89 = arith.constant 0 : index
    %288 = arith.index_cast %287 : i32 to index
    %c0_90 = arith.constant 0 : index
    %c0_91 = arith.constant 0 : index
    %289 = vector.load %arg1[%c0_89, %288, %c0_90, %c0_91] : memref<1x8x2x512xf32, #tpu.memory_space<vmem>>, vector<1x1x2x512xf32>
    %290 = vector.shape_cast %289 : vector<1x1x2x512xf32> to vector<2x512xf32>
    %291 = arith.truncf %278 : vector<2x128xf32> to vector<2x128xbf16>
    %cst_92 = arith.constant dense<0.000000e+00> : vector<2x512xf32>
    %292 = tpu.matmul %291, %1, %cst_92 {dimension_numbers = #tpu.dot_dimension_numbers<[1], [0], [0], [1], [0, 0, 1, 1], [], []>} : vector<2x128xbf16>, vector<128x512xbf16>, vector<2x512xf32> -> vector<2x512xf32>
    %293 = arith.addf %290, %292 : vector<2x512xf32>
    %294 = vector.extract_strided_slice %293 {offsets = [0, 0], sizes = [2, 128], strides = [1, 1]} : vector<2x512xf32> to vector<2x128xf32>
    %295 = arith.negf %294 : vector<2x128xf32>
    %296 = math.exp %295 : vector<2x128xf32>
    %cst_93 = arith.constant 1.000000e+00 : f32
    %297 = vector.broadcast %cst_93 : f32 to vector<2x128xf32>
    %298 = arith.addf %297, %296 : vector<2x128xf32>
    %299 = arith.divf %297, %298 : vector<2x128xf32>
    %300 = vector.extract_strided_slice %293 {offsets = [0, 128], sizes = [2, 128], strides = [1, 1]} : vector<2x512xf32> to vector<2x128xf32>
    %301 = arith.negf %300 : vector<2x128xf32>
    %302 = math.exp %301 : vector<2x128xf32>
    %cst_94 = arith.constant 1.000000e+00 : f32
    %303 = vector.broadcast %cst_94 : f32 to vector<2x128xf32>
    %304 = arith.addf %303, %302 : vector<2x128xf32>
    %305 = arith.divf %303, %304 : vector<2x128xf32>
    %306 = vector.extract_strided_slice %293 {offsets = [0, 256], sizes = [2, 128], strides = [1, 1]} : vector<2x512xf32> to vector<2x128xf32>
    %307 = math.tanh %306 : vector<2x128xf32>
    %308 = vector.extract_strided_slice %293 {offsets = [0, 384], sizes = [2, 128], strides = [1, 1]} : vector<2x512xf32> to vector<2x128xf32>
    %309 = arith.negf %308 : vector<2x128xf32>
    %310 = math.exp %309 : vector<2x128xf32>
    %cst_95 = arith.constant 1.000000e+00 : f32
    %311 = vector.broadcast %cst_95 : f32 to vector<2x128xf32>
    %312 = arith.addf %311, %310 : vector<2x128xf32>
    %313 = arith.divf %311, %312 : vector<2x128xf32>
    %314 = arith.mulf %305, %276 : vector<2x128xf32>
    %315 = arith.mulf %299, %307 : vector<2x128xf32>
    %316 = arith.addf %314, %315 : vector<2x128xf32>
    %317 = math.tanh %316 : vector<2x128xf32>
    %318 = arith.mulf %313, %317 : vector<2x128xf32>
    %319 = arith.index_cast %287 : i32 to index
    %c0_96 = arith.constant 0 : index
    %c0_97 = arith.constant 0 : index
    %320 = vector.load %arg3[%319, %c0_96, %c0_97] : memref<8x2x128xf32, #tpu.memory_space<vmem>>, vector<1x2x128xf32>
    %321 = vector.shape_cast %320 : vector<1x2x128xf32> to vector<2x128xf32>
    %322 = vector.shape_cast %318 : vector<2x128xf32> to vector<1x2x128xf32>
    tpu.vector_store %arg3[%319, %c0_96, %c0_97], %322 {strides = array<i32>} : memref<8x2x128xf32, #tpu.memory_space<vmem>>, vector<1x2x128xf32>,
    %c8_i32 = arith.constant 8 : i32
    return
  }
  func.func @transform_0(%arg0: i32) -> (i32, i32, i32, i32) {
    %c0_i32 = arith.constant 0 : i32
    %c0_i32_0 = arith.constant 0 : i32
    %c0_i32_1 = arith.constant 0 : i32
    %c0_i32_2 = arith.constant 0 : i32
    return %arg0, %c0_i32, %c0_i32_0, %c0_i32_1 : i32, i32, i32, i32
  }
  func.func @transform_1(%arg0: i32) -> (i32, i32, i32) {
    %c0_i32 = arith.constant 0 : i32
    %c0_i32_0 = arith.constant 0 : i32
    %c0_i32_1 = arith.constant 0 : i32
    return %arg0, %c0_i32, %c0_i32_0 : i32, i32, i32
  }
  func.func @transform_2(%arg0: i32) -> (i32, i32, i32) {
    %c0_i32 = arith.constant 0 : i32
    %c0_i32_0 = arith.constant 0 : i32
    %c0_i32_1 = arith.constant 0 : i32
    return %c0_i32, %c0_i32_0, %arg0 : i32, i32, i32
  }
}

</mosaic_0001>

<bundles_post_ra>
// kernel: model_encode.4
= control target key start
LH: loop header
LB: loop body
LE: loop exit
PB: predicated region body
PF: predicated region fallthrough
CT: control target
= control target key end

     0   :  { %s855_s9 = smov 0   ;;  %s955_s0 = inlined_call_operand.vmem [shape: f32[2,4,16,64], index: 0, kind: input, shape index: {}]   ;;  %s956_s1 = inlined_call_operand.vmem [shape: bf16[2,16,64], index: 1, kind: input, shape index: {}]   ;;  %s957_s2 = inlined_call_operand.vmem [shape: f32[2,16,16], index: 2, kind: output, shape index: {}]  }
   0x1 LB: > { %s861_s10 = sadd.s32 4294967295, %s831_s9   ;;  %p683_p0 = scmp.ge.s32.totalorder %s831_s9, 1  ;;  %s831_s9 = sphi %s855_s9, %s12_s9  }
   0x2   : > { %p122_p1 = scmp.lt.s32.totalorder %s831_s9, 3 }
   0x4   : > { %p123_p2 = pnand %p683_p0, %p122_p1 }
   0x5   : > { %p149_p3 = scmp.lt.s32.totalorder (!%p123_p2), %s861_s10, 1  ;;  %v833_v0 = vmov (!%p123_p2), 0.0   ;;  %vm834_vm0 = vmmov (!%p123_p2), 0   ;;  %v835_v2 = vmov (!%p123_p2), 0   ;;  %s690_s17 = smul.u32 (!%p123_p2), 48, %s861_s10  ;;  %vm178_vm1 = vcmask (!%p123_p2), 130048  }
   0x6   : > { %126 = sbr.rel (%p123_p2) target bundleno = 2846 (0xb1e), region = 28  ;;  %721 = vmatprep.subr.bf16.mxu0 (!%p123_p2), %v833_v0  ;;  %723 = vmatprep.mubr.msk.bf16.mxu0 (!%p123_p2), %vm834_vm0, %v833_v0  ;;  %s836_s22 = smov (!%p123_p2), 96  }
   0x7   : > { %727 = vmatprep.subr.bf16.mxu1 (!%p123_p2), %v833_v0  ;;  %729 = vmatprep.mubr.msk.bf16.mxu1 (!%p123_p2), %vm834_vm0, %v833_v0  ;;  %s837_s23 = smov (!%p123_p2), 16   ;;  %s838_s24 = smov (!%p123_p2), 32  }
   0x8   : > { %s839_s25 = smov (!%p123_p2), 80   ;;  %s694_s26 = sshll.u32 (!%p123_p2), %s861_s10, 1 }
   0x9   : > { %s909_s27 = smul.u32 (!%p123_p2), 3, %s861_s10  ;;  %s911_s28 = ssub.s32 (!%p123_p2), 1, %s694_s26 }
   0xa   : > { %s699_s4 = sshll.u32 (!%p123_p2), %s911_s28, 1  ;;  %s482_s8 = smul.u32 (!%p123_p2), 3, %s911_s28 }
   0xb   : > { %s275_s29 = sadd.s32 (!%p123_p2), %s911_s28, %s909_s27  ;;  %s379_s5 = sadd.s32 (!%p123_p2), %s699_s4, %s909_s27 }
   0xc   : > { %s695_s30 = sshll.u32 (!%p123_p2), %s275_s29, 4  ;;  %s700_s6 = sshll.u32 (!%p123_p2), %s379_s5, 4 }
   0xd   : > { %s870_s11 = scalar_select %p149_p3, %s861_s10, 1 }
   0xe   : > { %s483_s10 = sadd.s32 %s482_s8, %s909_s27 }
   0xf   : > { %s711_s12 = sshll.u32 %s870_s11, 3  ;;  %s710_s16 = sshll.u32 %s870_s11, 6 }
  0x10   : > { %s158_s15 = scalar_lea.vmem %s956_s1, %s711_s12  ;;  %s893_s20 = scalar_lea.vmem %s955_s0, %s710_s16 }
  0x11   : > { %v879_v1 = vld [vmem:[%s158_s15] sm:$0xff]   ;;  %s169_s21 = scalar_lea.vmem %s893_s20, %s690_s17  ;;  %s277_s3 = scalar_lea.vmem %s893_s20, %s695_s30 }
  0x12   : > { %722 = vmatpush3.bf16.msra.mxu0 %v879_v1  ;;  %728 = vmatpush3.bf16.msra.mxu1 %v879_v1  ;;  %v170_v3 = vld [vmem:[%s169_s21] sm:$0xff]  ;;  %v171_v5 = vld [vmem:[%s169_s21 + $0x8] sm:$0xff]  ;;  %s381_s7 = scalar_lea.vmem %s893_s20, %s700_s6  ;;  %s704_s12 = sshll.u32 %s483_s10, 4 }
  0x13   : > { %733 = vmatprep.subr.bf16.mxu0 %v833_v0  ;;  %739 = vmatprep.subr.bf16.mxu1 %v833_v0  ;;  %v278_v39 = vld [vmem:[%s277_s3] sm:$0xff]  ;;  %v279_v41 = vld [vmem:[%s277_s3 + $0x8] sm:$0xff]  ;;  %s485_s13 = scalar_lea.vmem %s893_s20, %s704_s12  ;;  %s712_s14 = sshll.u32 %s870_s11, 4 }
  0x14   : > { %s163_s17 = scalar_lea.vmem %s957_s2, %s712_s14 }
  0x15   : > { %724 = vmatmul.mubr.bf16.vlgmr.msra.gmra.mrb[0].mxu0 %v835_v2 }
  0x16   : > { %734 = vmatpush3.bf16.msra.mxu0 %v879_v1  ;;  %735 = vmatprep.mubr.msk.bf16.mxu0 %vm834_vm0, %v833_v0 }
  0xe8   : > { %v216_v4 = vpop.f32.mrb[0].mxu0 }
  0xe9   : > { %v223_v6 = vadd.f32 %v216_v4, %v170_v3  ;;  %v725_v7 = vpop.f32.mrb[1].mxu0 }
  0xea   : > { %v219_v8 = vpop.f32.mrb[2].mxu0 }
  0xeb   : > { %761 = vtanh.f32 %v223_v6  ;;  %v224_v9 = vadd.f32 %v219_v8, %v171_v5  ;;  %v726_v10 = vpop.f32.mrb[3].mxu0  ;;  %v692_v13 = vmul.f32 -1.442695, %v223_v6 }
  0xed   : > { %763 = vtanh.f32 %v224_v9  ;;  %v693_v14 = vmul.f32 -1.442695, %v224_v9 }
  0xee   : > { %765 = vpow2.f32 %v692_v13  ;;  %v383_v13 = vld [vmem:[%s381_s7 + $0x8] sm:$0xff] }
  0xef   : > { %767 = vpow2.f32 %v693_v14 }
  0xf5   : > { %v762_v11 = vpop.eup %761 }
  0xf6   : > { %243 = vrot.lane.b32.xlu0 %v762_v11, %s836_s22  ;;  %v382_v11 = vld [vmem:[%s381_s7] sm:$0xff] }
  0xf7   : > { %v764_v12 = vpop.eup %763 }
  0xf8   : > { %v766_v15 = vpop.eup %765 }
  0xf9   : > { %v231_v16 = vadd.f32 1.0, %v766_v15  ;;  %v768_v17 = vpop.eup %767 }
  0xfa   : > { %245 = vrot.lane.b32.xlu0 %v764_v12, %s836_s22  ;;  %v232_v18 = vadd.f32 1.0, %v768_v17 }
  0xfb   : > { %769 = vrcp.f32 %v231_v16 }
  0xfc   : > { %771 = vrcp.f32 %v232_v18 }
 0x105   : > { %v770_v19 = vpop.eup %769 }
 0x106   : > { %v772_v22 = vpop.eup %771  ;;  %v239_v25 = vmul.f32 0.0, %v770_v19 }
 0x107   : > { %v240_v28 = vmul.f32 0.0, %v772_v22 }
 0x168   : > { %v244_v20 = vpop.permute.xlu0 %243 }
 0x169   : > { %v249_v21 = vmul.f32 %v770_v19, %v244_v20 }
 0x16b   : > { %253 = vrot.lane.b32.xlu1 %v249_v21, %s837_s23 }
 0x16c   : > { %v246_v23 = vpop.permute.xlu0 %245 }
 0x16d   : > { %v250_v24 = vmul.f32 %v772_v22, %v246_v23 }
 0x16f   : > { %255 = vrot.lane.b32.xlu1 %v250_v24, %s837_s23 }
 0x1dd   : > { %v254_v26 = vpop.permute.xlu1 %253 }
 0x1de   : > { %v259_v27 = vadd.f32 %v254_v26, %v239_v25 }
 0x1e0   : > { %773 = vtanh.f32 %v259_v27 }
 0x1e1   : > { %v256_v29 = vpop.permute.xlu1 %255 }
 0x1e2   : > { %v260_v30 = vadd.f32 %v256_v29, %v240_v28 }
 0x1e4   : > { %775 = vtanh.f32 %v260_v30 }
 0x1ea   : > { %v774_v31 = vpop.eup %773 }
 0x1eb   : > { %265 = vrot.lane.b32.xlu0 %v774_v31, %s838_s24 }
 0x1ee   : > { %v776_v32 = vpop.eup %775 }
 0x1ef   : > { %267 = vrot.lane.b32.xlu1 %v776_v32, %s838_s24 }
 0x25d   : > { %v266_v33 = vpop.permute.xlu0 %265 }
 0x25e   : > { %v271_v35 = vmul.f32 %v770_v19, %v266_v33 }
 0x261   : > { %v268_v34 = vpop.permute.xlu1 %267 }
 0x262   : > { %v272_v36 = vmul.f32 %v772_v22, %v268_v34 }
 0x264   : > { %v280_v37 = vpack.c.bf16 %v272_v36, %v271_v35 }
 0x266   : > { %282 = vrot.lane.b32.xlu0 %v280_v37, %s839_s25 }
 0x2d8   : > { %v283_v38 = vpop.permute.xlu0 %282 }
 0x2d9   : > { %730 = vmatmul.mubr.msk.bf16.vlgmr.msra.gmra.mrb[0].mxu1 %vm178_vm1, %v283_v38 }
 0x2da   : > { %740 = vmatpush3.bf16.msra.mxu1 %v879_v1  ;;  %741 = vmatprep.mubr.msk.bf16.mxu1 %vm834_vm0, %v833_v0 }
 0x3ac   : > { %v321_v40 = vpop.f32.mrb[0].mxu1 }
 0x3ad   : > { %v328_v42 = vadd.f32 %v321_v40, %v278_v39  ;;  %v731_v43 = vpop.f32.mrb[1].mxu1 }
 0x3ae   : > { %v324_v44 = vpop.f32.mrb[2].mxu1 }
 0x3af   : > { %777 = vtanh.f32 %v328_v42  ;;  %v329_v45 = vadd.f32 %v324_v44, %v279_v41  ;;  %v732_v46 = vpop.f32.mrb[3].mxu1  ;;  %v697_v49 = vmul.f32 -1.442695, %v328_v42 }
 0x3b1   : > { %779 = vtanh.f32 %v329_v45  ;;  %v698_v50 = vmul.f32 -1.442695, %v329_v45 }
 0x3b2   : > { %781 = vpow2.f32 %v697_v49  ;;  %v487_v49 = vld [vmem:[%s485_s13 + $0x8] sm:$0xff] }
 0x3b3   : > { %783 = vpow2.f32 %v698_v50 }
 0x3b9   : > { %v778_v47 = vpop.eup %777 }
 0x3ba   : > { %348 = vrot.lane.b32.xlu1 %v778_v47, %s836_s22  ;;  %v486_v47 = vld [vmem:[%s485_s13] sm:$0xff] }
 0x3bb   : > { %v780_v48 = vpop.eup %779 }
 0x3bc   : > { %350 = vrot.lane.b32.xlu0 %v780_v48, %s836_s22  ;;  %v782_v51 = vpop.eup %781 }
 0x3bd   : > { %v784_v52 = vpop.eup %783  ;;  %v336_v53 = vadd.f32 1.0, %v782_v51 }
 0x3be   : > { %v337_v54 = vadd.f32 1.0, %v784_v52 }
 0x3bf   : > { %785 = vrcp.f32 %v336_v53 }
 0x3c0   : > { %787 = vrcp.f32 %v337_v54 }
 0x3c9   : > { %v786_v55 = vpop.eup %785 }
 0x3ca   : > { %v788_v58 = vpop.eup %787  ;;  %v344_v61 = vmul.f32 %v786_v55, %v259_v27 }
 0x3cb   : > { %v345_v0 = vmul.f32 %v788_v58, %v260_v30 }
 0x42c   : > { %v349_v56 = vpop.permute.xlu1 %348 }
 0x42d   : > { %v354_v57 = vmul.f32 %v786_v55, %v349_v56 }
 0x42e   : > { %v351_v59 = vpop.permute.xlu0 %350 }
 0x42f   : > { %358 = vrot.lane.b32.xlu1 %v354_v57, %s837_s23  ;;  %v355_v60 = vmul.f32 %v788_v58, %v351_v59 }
 0x431   : > { %360 = vrot.lane.b32.xlu0 %v355_v60, %s837_s23 }
 0x4a1   : > { %v359_v62 = vpop.permute.xlu1 %358 }
 0x4a2   : > { %v364_v63 = vadd.f32 %v359_v62, %v344_v61 }
 0x4a3   : > { %v361_v1 = vpop.permute.xlu0 %360 }
 0x4a4   : > { %789 = vtanh.f32 %v364_v63  ;;  %v365_v2 = vadd.f32 %v361_v1, %v345_v0 }
 0x4a6   : > { %791 = vtanh.f32 %v365_v2 }
 0x4ae   : > { %v790_v3 = vpop.eup %789 }
 0x4af   : > { %370 = vrot.lane.b32.xlu1 %v790_v3, %s838_s24 }
 0x4b0   : > { %v792_v4 = vpop.eup %791 }
 0x4b1   : > { %372 = vrot.lane.b32.xlu0 %v792_v4, %s838_s24 }
 0x521   : > { %v371_v5 = vpop.permute.xlu1 %370 }
 0x522   : > { %v376_v7 = vmul.f32 %v786_v55, %v371_v5 }
 0x523   : > { %v373_v6 = vpop.permute.xlu0 %372 }
 0x524   : > { %v377_v8 = vmul.f32 %v788_v58, %v373_v6 }
 0x526   : > { %v384_v9 = vpack.c.bf16 %v377_v8, %v376_v7 }
 0x528   : > { %386 = vrot.lane.b32.xlu1 %v384_v9, %s839_s25 }
 0x59a   : > { %v387_v10 = vpop.permute.xlu1 %386 }
 0x59b   : > { %736 = vmatmul.mubr.msk.bf16.vlgmr.msra.gmra.mrb[4].mxu0 %vm178_vm1, %v387_v10 }
 0x66e   : > { %v425_v12 = vpop.f32.mrb[4].mxu0 }
 0x66f   : > { %v432_v14 = vadd.f32 %v425_v12, %v382_v11  ;;  %v737_v15 = vpop.f32.mrb[5].mxu0 }
 0x670   : > { %v428_v16 = vpop.f32.mrb[6].mxu0 }
 0x671   : > { %793 = vtanh.f32 %v432_v14  ;;  %v433_v17 = vadd.f32 %v428_v16, %v383_v13  ;;  %v738_v18 = vpop.f32.mrb[7].mxu0  ;;  %v702_v21 = vmul.f32 -1.442695, %v432_v14 }
 0x673   : > { %795 = vtanh.f32 %v433_v17  ;;  %v703_v22 = vmul.f32 -1.442695, %v433_v17 }
 0x674   : > { %797 = vpow2.f32 %v702_v21 }
 0x675   : > { %799 = vpow2.f32 %v703_v22 }
 0x67b   : > { %v794_v19 = vpop.eup %793 }
 0x67c   : > { %452 = vrot.lane.b32.xlu0 %v794_v19, %s836_s22 }
 0x67d   : > { %v796_v20 = vpop.eup %795 }
 0x67e   : > { %454 = vrot.lane.b32.xlu1 %v796_v20, %s836_s22  ;;  %v798_v23 = vpop.eup %797 }
 0x67f   : > { %v800_v24 = vpop.eup %799  ;;  %v440_v25 = vadd.f32 1.0, %v798_v23 }
 0x680   : > { %v441_v26 = vadd.f32 1.0, %v800_v24 }
 0x681   : > { %801 = vrcp.f32 %v440_v25 }
 0x682   : > { %803 = vrcp.f32 %v441_v26 }
 0x68b   : > { %v802_v27 = vpop.eup %801 }
 0x68c   : > { %v804_v30 = vpop.eup %803  ;;  %v448_v33 = vmul.f32 %v802_v27, %v364_v63 }
 0x68d   : > { %v449_v36 = vmul.f32 %v804_v30, %v365_v2 }
 0x6ee   : > { %v453_v28 = vpop.permute.xlu0 %452 }
 0x6ef   : > { %v458_v29 = vmul.f32 %v802_v27, %v453_v28 }
 0x6f0   : > { %v455_v31 = vpop.permute.xlu1 %454 }
 0x6f1   : > { %462 = vrot.lane.b32.xlu0 %v458_v29, %s837_s23  ;;  %v459_v32 = vmul.f32 %v804_v30, %v455_v31 }
 0x6f3   : > { %464 = vrot.lane.b32.xlu1 %v459_v32, %s837_s23 }
 0x763   : > { %v463_v34 = vpop.permute.xlu0 %462 }
 0x764   : > { %v468_v35 = vadd.f32 %v463_v34, %v448_v33 }
 0x765   : > { %v465_v37 = vpop.permute.xlu1 %464 }
 0x766   : > { %805 = vtanh.f32 %v468_v35  ;;  %v469_v38 = vadd.f32 %v465_v37, %v449_v36 }
 0x768   : > { %807 = vtanh.f32 %v469_v38 }
 0x770   : > { %v806_v39 = vpop.eup %805 }
 0x771   : > { %474 = vrot.lane.b32.xlu0 %v806_v39, %s838_s24 }
 0x772   : > { %v808_v40 = vpop.eup %807 }
 0x773   : > { %476 = vrot.lane.b32.xlu1 %v808_v40, %s838_s24 }
 0x7e3   : > { %v475_v41 = vpop.permute.xlu0 %474 }
 0x7e4   : > { %v480_v43 = vmul.f32 %v802_v27, %v475_v41 }
 0x7e5   : > { %v477_v42 = vpop.permute.xlu1 %476 }
 0x7e6   : > { %v481_v44 = vmul.f32 %v804_v30, %v477_v42 }
 0x7e8   : > { %v488_v45 = vpack.c.bf16 %v481_v44, %v480_v43 }
 0x7ea   : > { %490 = vrot.lane.b32.xlu0 %v488_v45, %s839_s25 }
 0x85c   : > { %v491_v46 = vpop.permute.xlu0 %490 }
 0x85d   : > { %742 = vmatmul.mubr.msk.bf16.vlgmr.msra.gmra.mrb[4].mxu1 %vm178_vm1, %v491_v46 }
 0x930   : > { %v529_v48 = vpop.f32.mrb[4].mxu1 }
 0x931   : > { %v536_v50 = vadd.f32 %v529_v48, %v486_v47  ;;  %v743_v51 = vpop.f32.mrb[5].mxu1 }
 0x932   : > { %v532_v52 = vpop.f32.mrb[6].mxu1 }
 0x933   : > { %809 = vtanh.f32 %v536_v50  ;;  %v537_v53 = vadd.f32 %v532_v52, %v487_v49  ;;  %v744_v54 = vpop.f32.mrb[7].mxu1  ;;  %v706_v57 = vmul.f32 -1.442695, %v536_v50 }
 0x935   : > { %811 = vtanh.f32 %v537_v53  ;;  %v707_v58 = vmul.f32 -1.442695, %v537_v53 }
 0x936   : > { %813 = vpow2.f32 %v706_v57 }
 0x937   : > { %815 = vpow2.f32 %v707_v58 }
 0x93d   : > { %v810_v55 = vpop.eup %809 }
 0x93e   : > { %556 = vrot.lane.b32.xlu1 %v810_v55, %s836_s22 }
 0x93f   : > { %v812_v56 = vpop.eup %811 }
 0x940   : > { %558 = vrot.lane.b32.xlu0 %v812_v56, %s836_s22  ;;  %v814_v59 = vpop.eup %813 }
 0x941   : > { %v816_v60 = vpop.eup %815  ;;  %v544_v61 = vadd.f32 1.0, %v814_v59 }
 0x942   : > { %v545_v62 = vadd.f32 1.0, %v816_v60 }
 0x943   : > { %817 = vrcp.f32 %v544_v61 }
 0x944   : > { %819 = vrcp.f32 %v545_v62 }
 0x94d   : > { %v818_v63 = vpop.eup %817 }
 0x94e   : > { %v820_v2 = vpop.eup %819  ;;  %v552_v5 = vmul.f32 %v818_v63, %v468_v35 }
 0x94f   : > { %v553_v8 = vmul.f32 %v820_v2, %v469_v38 }
 0x9b0   : > { %v557_v0 = vpop.permute.xlu1 %556 }
 0x9b1   : > { %v562_v1 = vmul.f32 %v818_v63, %v557_v0 }
 0x9b2   : > { %v559_v3 = vpop.permute.xlu0 %558 }
 0x9b3   : > { %566 = vrot.lane.b32.xlu1 %v562_v1, %s837_s23  ;;  %v563_v4 = vmul.f32 %v820_v2, %v559_v3 }
 0x9b5   : > { %568 = vrot.lane.b32.xlu0 %v563_v4, %s837_s23 }
 0xa25   : > { %v567_v6 = vpop.permute.xlu1 %566 }
 0xa26   : > { %v572_v7 = vadd.f32 %v567_v6, %v552_v5 }
 0xa27   : > { %v569_v9 = vpop.permute.xlu0 %568 }
 0xa28   : > { %821 = vtanh.f32 %v572_v7  ;;  %v573_v10 = vadd.f32 %v569_v9, %v553_v8 }
 0xa2a   : > { %823 = vtanh.f32 %v573_v10 }
 0xa32   : > { %v822_v11 = vpop.eup %821 }
 0xa33   : > { %578 = vrot.lane.b32.xlu1 %v822_v11, %s838_s24 }
 0xa34   : > { %v824_v12 = vpop.eup %823 }
 0xa35   : > { %580 = vrot.lane.b32.xlu0 %v824_v12, %s838_s24 }
 0xaa5   : > { %v579_v13 = vpop.permute.xlu1 %578 }
 0xaa6   : > { %v584_v14 = vmul.f32 %v818_v63, %v579_v13 }
 0xaa7   : > { %v581_v15 = vpop.permute.xlu0 %580 }
 0xaa8   : > { %588 = vrot.lane.b32.xlu1 %v584_v14, %s839_s25  ;;  %v585_v16 = vmul.f32 %v820_v2, %v581_v15 }
 0xaaa   : > { %590 = vrot.lane.b32.xlu0 %v585_v16, %s839_s25 }
 0xb1a   : > { %v589_v17 = vpop.permute.xlu1 %588 }
 0xb1b   : > { %594 = vst.msk [vmem:[%s163_s17] sm:$0xff] %vm178_vm1, %v589_v17 }
 0xb1c   : > { %v591_v18 = vpop.permute.xlu0 %590 }
 0xb1d   : > { %595 = vst.msk [vmem:[%s163_s17 + $0x8] sm:$0xff] %vm178_vm1, %v591_v18 }
 0xb1e PF: > { %s12_s9 = sadd.s32 1, %s831_s9  }
 0xb1f   : > { %p9_p4 = scmp.ge.s32.totalorder %s12_s9, 4  }
 0xb21   :  { %11 = sbr.rel (!%p9_p4) target bundleno = 1 (0x1), region = 65 }

// kernel: model_encode.5
= control target key start
LH: loop header
LB: loop body
LE: loop exit
PB: predicated region body
PF: predicated region fallthrough
CT: control target
= control target key end

     0   :  { %s2110_s9 = smov 0   ;;  %s2112_s10 = smov 0   ;;  %s2717_s0 = inlined_call_operand.vmem [shape: f32[2,8,2,512], index: 0, kind: input, shape index: {}]   ;;  %s2718_s1 = inlined_call_operand.vmem [shape: bf16[2,128,512], index: 1, kind: input, shape index: {}]   ;;  %s2719_s2 = inlined_call_operand.vmem [shape: f32[8,2,256], index: 2, kind: output, shape index: {}]  }
   0x1   :  { %s2114_s11 = smov 0  }
   0x2 LB: > { %s2123_s12 = sadd.s32 4294967295, %s2091_s11   ;;  %s2125_s13 = sadd.s32 1, %s2091_s11   ;;  %s2091_s11 = sphi %s2114_s11, %s2723_s11   ;;  %s2087_s10 = sphi %s2112_s10, %s2722_s10   ;;  %s2083_s9 = sphi %s2110_s9, %s2721_s9  }
   0x3   : > { %s68_s14 = ssub.s32 %s2091_s11, %s2125_s13  ;;  %s71_s15 = sadd.s32 1, %s2087_s10 }
   0x4   : > { %p69_p0 = scmp.eq.s32.totalorder %s68_s14, 0  ;;  %p81_p1 = scmp.ne.s32.totalorder %s2087_s10, %s2083_s9 }
   0x5   : > { %p82_p2 = scmp.eq.s32.totalorder %s2123_s12, 1  ;;  %p1732_p3 = scmp.ge.s32.totalorder %s2091_s11, 1 }
   0x6   : > { %s2133_s16 = scalar_select %p69_p0, %s2087_s10, %s71_s15  }
   0x7   : > { %p2135_p4 = por %p82_p2, %p81_p1  ;;  %p122_p5 = scmp.lt.s32.totalorder %s2091_s11, 3 }
   0x9   : > { %p123_p6 = pnand %p1732_p3, %p122_p5 }
   0xa   : > { %p148_p7 = scmp.lt.s32.totalorder (!%p123_p6), %s2123_s12, 1  ;;  %v2093_v0 = vmov (!%p123_p6), 0   ;;  %v2094_v33 = vmov (!%p123_p6), 1983009808   ;;  %v447_v35 = vlaneseq (!%p123_p6)  ;;  %s1827_s24 = smul.u32 (!%p123_p6), 56, %s2123_s12 }
   0xb   : > { %126 = sbr.rel (%p123_p6) target bundleno = 2210 (0x8a2), region = 28  ;;  %388 = vmatprep.mubr.bf16.mxu0 (!%p123_p6), %v2093_v0  ;;  %429 = vmatprep.mubr.bf16.mxu1 (!%p123_p6), %v2093_v0  ;;  %v445_v34 = vunpack.c.l.s4 (!%p123_p6), %v2094_v33  ;;  %s145_s29 = sand.u32 (!%p123_p6), 1, %s2083_s9  }
   0xc   : > { %v448_v37 = vshrl.u32 (!%p123_p6), %v447_v35, 7  ;;  %s1733_s30 = sshll.u32 (!%p123_p6), %s145_s29, 4  ;;  %s1775_s3 = smul.u32 (!%p123_p6), 14, %s2123_s12 }
   0xd   : > { %v446_v36 = vunpack.c.0.s8 (!%p123_p6), %v445_v34  ;;  %s2334_s4 = scalar_lea.vmem (!%p123_p6), [#allocation2], %s1733_s30  ;;  %s1776_s6 = sshll.u32 (!%p123_p6), %s2123_s12, 1 }
   0xe   : > { %s493_s5 = scalar_lea.vmem (!%p123_p6), %s2334_s4, %s1775_s3 [#allocation2]  ;;  %s2373_s7 = smul.u32 (!%p123_p6), 7, %s2123_s12 }
   0xf   : > { %v2324_v40 = vsub.s32 (!%p123_p6), %v446_v36, %v448_v37  ;;  %s2377_s8 = ssub.s32 (!%p123_p6), 1, %s1776_s6 }
  0x10   : > { %s2381_s9 = sadd.s32 (!%p123_p6), %s2377_s8, %s2373_s7  ;;  %s788_s26 = smul.u32 (!%p123_p6), 3, %s2377_s8 }
  0x11   : > { %s1828_s11 = sshll.u32 (!%p123_p6), %s2381_s9, 3  ;;  %s1782_s15 = sshll.u32 (!%p123_p6), %s2381_s9, 1 }
  0x12   : > { %s2143_s18 = scalar_select %p148_p7, %s2123_s12, 1 }
  0x13   : > { %s1796_s9 = sshll.u32 %s2377_s8, 2 }
  0x14   : > { %s1826_s19 = sshll.u32 %s2143_s18, 8  ;;  %s1825_s23 = sshll.u32 %s2143_s18, 6 }
  0x15   : > { %s2149_s22 = scalar_lea.vmem %s2718_s1, %s1826_s19  ;;  %s2322_s27 = scalar_lea.vmem %s2717_s0, %s1825_s23 }
  0x16   : > { %v2152_v1 = vld [vmem:[%s2149_s22 + $0x4] ss:$16 sps:$4 sm:$0xff]   ;;  %v2155_v2 = vld [vmem:[%s2149_s22 + $0xc] ss:$16 sps:$4 sm:$0xff]   ;;  %v2159_v3 = vld [vmem:[%s2149_s22] ss:$16 sps:$4 sm:$0xff]   ;;  %s194_s28 = scalar_lea.vmem %s2322_s27, %s1827_s24  ;;  %s500_s14 = scalar_lea.vmem %s2322_s27, %s1828_s11 }
  0x17   : > { %356 = vmatprep.subr.bf16.mxu0 %v2152_v1  ;;  %v2162_v4 = vld [vmem:[%s2149_s22 + $0x8] ss:$16 sps:$4 sm:$0xff]   ;;  %397 = vmatprep.subr.bf16.mxu1 %v2155_v2  ;;  %v2166_v5 = vld [vmem:[%s2149_s22 + $0x24] ss:$16 sps:$4 sm:$0xff]   ;;  %v2171_v6 = vld [vmem:[%s2149_s22 + $0x2c] ss:$16 sps:$4 sm:$0xff]   ;;  %s640_s18 = scalar_lea.vmem %s2334_s4, %s1782_s15 [#allocation2]  ;;  %s2525_s11 = sadd.s32 %s1796_s9, %s2373_s7 }
  0x18   : > { %357 = vmatpush1.bf16.msra.mxu0 %v2159_v3  ;;  %398 = vmatpush1.bf16.msra.mxu1 %v2162_v4  ;;  %v2174_v7 = vld [vmem:[%s2149_s22 + $0x20] ss:$16 sps:$4 sm:$0xff]   ;;  %v2178_v8 = vld [vmem:[%s2149_s22 + $0x28] ss:$16 sps:$4 sm:$0xff]   ;;  %v2182_v9 = vld [vmem:[%s2149_s22 + $0x44] ss:$16 sps:$4 sm:$0xff]  }
  0x19   : > { %358 = vmatprep.subr.bf16.mxu0 %v2166_v5  ;;  %399 = vmatprep.subr.bf16.mxu1 %v2171_v6  ;;  %v2185_v10 = vld [vmem:[%s2149_s22 + $0x4c] ss:$16 sps:$4 sm:$0xff]   ;;  %v2188_v11 = vld [vmem:[%s2149_s22 + $0x40] ss:$16 sps:$4 sm:$0xff]   ;;  %v2191_v12 = vld [vmem:[%s2149_s22 + $0x48] ss:$16 sps:$4 sm:$0xff]  }
  0x1a   : > { %v2196_v13 = vld [vmem:[%s2149_s22 + $0x64] ss:$16 sps:$4 sm:$0xff]   ;;  %v2201_v14 = vld [vmem:[%s2149_s22 + $0x6c] ss:$16 sps:$4 sm:$0xff]   ;;  %v2204_v15 = vld [vmem:[%s2149_s22 + $0x60] ss:$16 sps:$4 sm:$0xff]  }
  0x1b   : > { %v2209_v16 = vld [vmem:[%s2149_s22 + $0x68] ss:$16 sps:$4 sm:$0xff]   ;;  %v2212_v17 = vld [vmem:[%s2149_s22 + $0x84] ss:$16 sps:$4 sm:$0xff]   ;;  %v2217_v18 = vld [vmem:[%s2149_s22 + $0x8c] ss:$16 sps:$4 sm:$0xff]  }
  0x1c   : > { %359 = vmatpush1.bf16.msra.mxu0 %v2174_v7  ;;  %400 = vmatpush1.bf16.msra.mxu1 %v2178_v8  ;;  %v2220_v19 = vld [vmem:[%s2149_s22 + $0x80] ss:$16 sps:$4 sm:$0xff]   ;;  %v2223_v20 = vld [vmem:[%s2149_s22 + $0x88] ss:$16 sps:$4 sm:$0xff]   ;;  %v2228_v21 = vld [vmem:[%s2149_s22 + $0xa4] ss:$16 sps:$4 sm:$0xff]  }
  0x1d   : > { %360 = vmatprep.subr.bf16.mxu0 %v2182_v9  ;;  %401 = vmatprep.subr.bf16.mxu1 %v2185_v10  ;;  %v2233_v22 = vld [vmem:[%s2149_s22 + $0xac] ss:$16 sps:$4 sm:$0xff]   ;;  %v2238_v23 = vld [vmem:[%s2149_s22 + $0xa0] ss:$16 sps:$4 sm:$0xff]   ;;  %v2241_v24 = vld [vmem:[%s2149_s22 + $0xa8] ss:$16 sps:$4 sm:$0xff]  }
  0x1e   : > { %v2246_v25 = vld [vmem:[%s2149_s22 + $0xc4] ss:$16 sps:$4 sm:$0xff]   ;;  %v2249_v26 = vld [vmem:[%s2149_s22 + $0xcc] ss:$16 sps:$4 sm:$0xff]   ;;  %v2254_v27 = vld [vmem:[%s2149_s22 + $0xc0] ss:$16 sps:$4 sm:$0xff]  }
  0x1f   : > { %v2257_v28 = vld [vmem:[%s2149_s22 + $0xc8] ss:$16 sps:$4 sm:$0xff]   ;;  %v2262_v29 = vld [vmem:[%s2149_s22 + $0xe4] ss:$16 sps:$4 sm:$0xff]   ;;  %v2265_v30 = vld [vmem:[%s2149_s22 + $0xec] ss:$16 sps:$4 sm:$0xff]  }
  0x20   : > { %361 = vmatpush1.bf16.msra.mxu0 %v2188_v11  ;;  %402 = vmatpush1.bf16.msra.mxu1 %v2191_v12  ;;  %v2270_v31 = vld [vmem:[%s2149_s22 + $0xe0] ss:$16 sps:$4 sm:$0xff]   ;;  %v2273_v32 = vld [vmem:[%s2149_s22 + $0xe8] ss:$16 sps:$4 sm:$0xff]   ;;  %s1783_s19 = sshll.u32 %s2377_s8, 1  ;;  %s1372_s9 = smul.u32 7, %s2377_s8 }
  0x21   : > { %362 = vmatprep.subr.bf16.mxu0 %v2196_v13  ;;  %403 = vmatprep.subr.bf16.mxu1 %v2201_v14  ;;  %v195_v51 = vld [vmem:[%s194_s28] sm:$0xff]  ;;  %s2429_s20 = sadd.s32 %s1783_s19, %s2373_s7  ;;  %s2477_s28 = sadd.s32 %s788_s26, %s2373_s7 }
  0x22   : > { %s1829_s21 = sshll.u32 %s2429_s20, 3  ;;  %s1789_s24 = sshll.u32 %s2429_s20, 1 }
  0x23   : > { %s646_s23 = scalar_lea.vmem %s2322_s27, %s1829_s21  ;;  %s786_s25 = scalar_lea.vmem %s2334_s4, %s1789_s24 [#allocation2] }
  0x24   : > { %363 = vmatpush1.bf16.msra.mxu0 %v2204_v15  ;;  %404 = vmatpush1.bf16.msra.mxu1 %v2209_v16  ;;  %s1830_s29 = sshll.u32 %s2477_s28, 3  ;;  %s1795_s3 = sshll.u32 %s2477_s28, 1 }
  0x25   : > { %364 = vmatprep.subr.bf16.mxu0 %v2212_v17  ;;  %405 = vmatprep.subr.bf16.mxu1 %v2217_v18  ;;  %s792_s30 = scalar_lea.vmem %s2322_s27, %s1830_s29  ;;  %s1080_s20 = smul.u32 5, %s2377_s8 }
  0x26   : > { %s1226_s28 = smul.u32 6, %s2377_s8 }
  0x27   : > { %s2627_s21 = sadd.s32 %s1080_s20, %s2373_s7 }
  0x28   : > { %365 = vmatpush1.bf16.msra.mxu0 %v2220_v19  ;;  %406 = vmatpush1.bf16.msra.mxu1 %v2223_v20  ;;  %s2673_s29 = sadd.s32 %s1226_s28, %s2373_s7 }
  0x29   : > { %366 = vmatprep.subr.bf16.mxu0 %v2228_v21  ;;  %407 = vmatprep.subr.bf16.mxu1 %v2233_v22 }
  0x2c   : > { %367 = vmatpush1.bf16.msra.mxu0 %v2238_v23  ;;  %408 = vmatpush1.bf16.msra.mxu1 %v2241_v24 }
  0x2d   : > { %368 = vmatprep.subr.bf16.mxu0 %v2246_v25  ;;  %409 = vmatprep.subr.bf16.mxu1 %v2249_v26 }
  0x30   : > { %369 = vmatpush1.bf16.msra.mxu0 %v2254_v27  ;;  %410 = vmatpush1.bf16.msra.mxu1 %v2257_v28 }
  0x31   : > { %370 = vmatprep.subr.bf16.mxu0 %v2262_v29  ;;  %411 = vmatprep.subr.bf16.mxu1 %v2265_v30 }
  0x34   : > { %371 = vmatpush1.bf16.msra.mxu0 %v2270_v31  ;;  %412 = vmatpush1.bf16.msra.mxu1 %v2273_v32 }
  0x35   : > { %503 = vmatprep.subr.bf16.mxu0 %v2152_v1  ;;  %544 = vmatprep.subr.bf16.mxu1 %v2155_v2 }
  0x37   : > { %389 = vmatmul.mubr.bf16.vlgmr.msra.gmra.mrb[0].mxu0 %v2093_v0  ;;  %430 = vmatmul.mubr.bf16.vlgmr.msra.gmra.mrb[0].mxu1 %v2093_v0 }
  0x38   : > { %504 = vmatpush1.bf16.msra.mxu0 %v2159_v3  ;;  %545 = vmatpush1.bf16.msra.mxu1 %v2162_v4 }
  0x39   : > { %505 = vmatprep.subr.bf16.mxu0 %v2166_v5  ;;  %546 = vmatprep.subr.bf16.mxu1 %v2171_v6 }
  0x3a   : > { %535 = vmatprep.mubr.bf16.mxu0 %v2093_v0  ;;  %576 = vmatprep.mubr.bf16.mxu1 %v2093_v0 }
  0x3c   : > { %506 = vmatpush1.bf16.msra.mxu0 %v2174_v7  ;;  %547 = vmatpush1.bf16.msra.mxu1 %v2178_v8 }
  0x3d   : > { %507 = vmatprep.subr.bf16.mxu0 %v2182_v9  ;;  %548 = vmatprep.subr.bf16.mxu1 %v2185_v10 }
  0x40   : > { %508 = vmatpush1.bf16.msra.mxu0 %v2188_v11  ;;  %549 = vmatpush1.bf16.msra.mxu1 %v2191_v12 }
  0x41   : > { %509 = vmatprep.subr.bf16.mxu0 %v2196_v13  ;;  %550 = vmatprep.subr.bf16.mxu1 %v2201_v14 }
  0x44   : > { %510 = vmatpush1.bf16.msra.mxu0 %v2204_v15  ;;  %551 = vmatpush1.bf16.msra.mxu1 %v2209_v16 }
  0x45   : > { %511 = vmatprep.subr.bf16.mxu0 %v2212_v17  ;;  %552 = vmatprep.subr.bf16.mxu1 %v2217_v18 }
  0x48   : > { %512 = vmatpush1.bf16.msra.mxu0 %v2220_v19  ;;  %553 = vmatpush1.bf16.msra.mxu1 %v2223_v20 }
  0x49   : > { %513 = vmatprep.subr.bf16.mxu0 %v2228_v21  ;;  %554 = vmatprep.subr.bf16.mxu1 %v2233_v22 }
  0x4c   : > { %514 = vmatpush1.bf16.msra.mxu0 %v2238_v23  ;;  %555 = vmatpush1.bf16.msra.mxu1 %v2241_v24 }
  0x4d   : > { %515 = vmatprep.subr.bf16.mxu0 %v2246_v25  ;;  %556 = vmatprep.subr.bf16.mxu1 %v2249_v26 }
  0x50   : > { %516 = vmatpush1.bf16.msra.mxu0 %v2254_v27  ;;  %557 = vmatpush1.bf16.msra.mxu1 %v2257_v28 }
  0x51   : > { %517 = vmatprep.subr.bf16.mxu0 %v2262_v29  ;;  %558 = vmatprep.subr.bf16.mxu1 %v2265_v30 }
  0x54   : > { %518 = vmatpush1.bf16.msra.mxu0 %v2270_v31  ;;  %559 = vmatpush1.bf16.msra.mxu1 %v2273_v32 }
  0x55   : > { %649 = vmatprep.subr.bf16.mxu0 %v2152_v1  ;;  %690 = vmatprep.subr.bf16.mxu1 %v2155_v2 }
 0x10a   : > { %v390_v38 = vpop.f32.mrb[0].mxu0  ;;  %v431_v39 = vpop.f32.mrb[0].mxu1 }
 0x10b   : > { %v392_v41 = vpop.f32.mrb[1].mxu0  ;;  %v433_v42 = vpop.f32.mrb[1].mxu1 }
 0x10c   : > { %v442_v43 = vcombine.low %v390_v38, %v392_v41  ;;  %v443_v44 = vcombine.low %v431_v39, %v433_v42  ;;  %v394_v45 = vpop.f32.mrb[2].mxu0  ;;  %v435_v46 = vpop.f32.mrb[2].mxu1 }
 0x10d   : > { %v395_v47 = vpop.f32.mrb[3].mxu0  ;;  %v436_v48 = vpop.f32.mrb[3].mxu1 }
 0x10e   : > { %v450_v49 = vrot.slane %v442_v43, %v2324_v40  ;;  %v457_v50 = vrot.slane %v443_v44, %v2324_v40 }
 0x110   : > { %v458_v52 = vcombine.low %v450_v49, %v457_v50 }
 0x112   : > { %v460_v53 = vadd.f32 %v458_v52, %v195_v51 }
 0x114   : > { %v1772_v54 = vmul.f32 -1.442695, %v460_v53  ;;  %v468_v55 = vrot.slane %v460_v53, 2  ;;  %v479_v57 = vrot.slane %v460_v53, 6  ;;  %v476_v60 = vrot.slane %v460_v53, 4 }
 0x116   : > { %1909 = vpow2.f32 %v1772_v54  ;;  %v1773_v56 = vmul.f32 -1.442695, %v468_v55  ;;  %v1774_v58 = vmul.f32 -1.442695, %v479_v57 }
 0x118   : > { %1911 = vpow2.f32 %v1773_v56 }
 0x119   : > { %1913 = vpow2.f32 %v1774_v58  ;;  %v501_v58 = vld [vmem:[%s500_s14] sm:$0xff]  ;;  %s1831_s14 = sshll.u32 %s2525_s11, 3 }
 0x11a   : > { %s938_s15 = scalar_lea.vmem %s2322_s27, %s1831_s14 }
 0x120   : > { %v1910_v59 = vpop.eup %1909 }
 0x121   : > { %v464_v61 = vadd.f32 1.0, %v1910_v59 }
 0x122   : > { %v1912_v62 = vpop.eup %1911 }
 0x123   : > { %1915 = vrcp.f32 %v464_v61  ;;  %v473_v63 = vadd.f32 1.0, %v1912_v62  ;;  %v1914_v33 = vpop.eup %1913 }
 0x124   : > { %1917 = vtanh.f32 %v476_v60  ;;  %v484_v37 = vadd.f32 1.0, %v1914_v33 }
 0x125   : > { %1919 = vrcp.f32 %v473_v63 }
 0x126   : > { %1921 = vrcp.f32 %v484_v37 }
 0x12d   : > { %v1916_v34 = vpop.eup %1915 }
 0x12e   : > { %v1918_v35 = vpop.eup %1917 }
 0x12f   : > { %v1920_v36 = vpop.eup %1919  ;;  %v488_v39 = vmul.f32 %v1918_v35, %v1916_v34 }
 0x130   : > { %v487_v38 = vmul.f32 0.0, %v1920_v36  ;;  %v1922_v42 = vpop.eup %1921 }
 0x132   : > { %v2329_v41 = vadd.f32 %v488_v39, %v487_v38 }
 0x134   : > { %1923 = vtanh.f32 %v2329_v41 }
 0x13e   : > { %v1924_v43 = vpop.eup %1923 }
 0x13f   : > { %v491_v44 = vmul.f32 %v1924_v43, %v1922_v42 }
 0x141   : > { %494 = vst [vmem:[%s493_s5] sm:$0x3] %v491_v44  ;;  %v502_v45 = vpack.c.bf16 %v491_v44, %v491_v44  ;;  %s932_s5 = scalar_lea.vmem %s2334_s4, %s1795_s3 [#allocation2] }
 0x143   : > { %536 = vmatmul.mubr.bf16.vlgmr.msra.gmra.mrb[4].mxu0 %v502_v45  ;;  %577 = vmatmul.mubr.bf16.vlgmr.msra.gmra.mrb[4].mxu1 %v502_v45 }
 0x144   : > { %650 = vmatpush1.bf16.msra.mxu0 %v2159_v3  ;;  %691 = vmatpush1.bf16.msra.mxu1 %v2162_v4 }
 0x145   : > { %651 = vmatprep.subr.bf16.mxu0 %v2166_v5  ;;  %692 = vmatprep.subr.bf16.mxu1 %v2171_v6 }
 0x146   : > { %681 = vmatprep.mubr.bf16.mxu0 %v2093_v0  ;;  %722 = vmatprep.mubr.bf16.mxu1 %v2093_v0 }
 0x148   : > { %652 = vmatpush1.bf16.msra.mxu0 %v2174_v7  ;;  %693 = vmatpush1.bf16.msra.mxu1 %v2178_v8 }
 0x149   : > { %653 = vmatprep.subr.bf16.mxu0 %v2182_v9  ;;  %694 = vmatprep.subr.bf16.mxu1 %v2185_v10 }
 0x14c   : > { %654 = vmatpush1.bf16.msra.mxu0 %v2188_v11  ;;  %695 = vmatpush1.bf16.msra.mxu1 %v2191_v12 }
 0x14d   : > { %655 = vmatprep.subr.bf16.mxu0 %v2196_v13  ;;  %696 = vmatprep.subr.bf16.mxu1 %v2201_v14 }
 0x150   : > { %656 = vmatpush1.bf16.msra.mxu0 %v2204_v15  ;;  %697 = vmatpush1.bf16.msra.mxu1 %v2209_v16 }
 0x151   : > { %657 = vmatprep.subr.bf16.mxu0 %v2212_v17  ;;  %698 = vmatprep.subr.bf16.mxu1 %v2217_v18 }
 0x154   : > { %658 = vmatpush1.bf16.msra.mxu0 %v2220_v19  ;;  %699 = vmatpush1.bf16.msra.mxu1 %v2223_v20 }
 0x155   : > { %659 = vmatprep.subr.bf16.mxu0 %v2228_v21  ;;  %700 = vmatprep.subr.bf16.mxu1 %v2233_v22 }
 0x158   : > { %660 = vmatpush1.bf16.msra.mxu0 %v2238_v23  ;;  %701 = vmatpush1.bf16.msra.mxu1 %v2241_v24 }
 0x159   : > { %661 = vmatprep.subr.bf16.mxu0 %v2246_v25  ;;  %702 = vmatprep.subr.bf16.mxu1 %v2249_v26 }
 0x15c   : > { %662 = vmatpush1.bf16.msra.mxu0 %v2254_v27  ;;  %703 = vmatpush1.bf16.msra.mxu1 %v2257_v28 }
 0x15d   : > { %663 = vmatprep.subr.bf16.mxu0 %v2262_v29  ;;  %704 = vmatprep.subr.bf16.mxu1 %v2265_v30 }
 0x160   : > { %664 = vmatpush1.bf16.msra.mxu0 %v2270_v31  ;;  %705 = vmatpush1.bf16.msra.mxu1 %v2273_v32 }
 0x161   : > { %795 = vmatprep.subr.bf16.mxu0 %v2152_v1  ;;  %836 = vmatprep.subr.bf16.mxu1 %v2155_v2 }
 0x216   : > { %v537_v46 = vpop.f32.mrb[4].mxu0  ;;  %v578_v47 = vpop.f32.mrb[4].mxu1 }
 0x217   : > { %v539_v48 = vpop.f32.mrb[5].mxu0  ;;  %v580_v49 = vpop.f32.mrb[5].mxu1 }
 0x218   : > { %v589_v50 = vcombine.low %v537_v46, %v539_v48  ;;  %v590_v51 = vcombine.low %v578_v47, %v580_v49  ;;  %v541_v52 = vpop.f32.mrb[6].mxu0  ;;  %v582_v53 = vpop.f32.mrb[6].mxu1 }
 0x219   : > { %v542_v54 = vpop.f32.mrb[7].mxu0  ;;  %v583_v55 = vpop.f32.mrb[7].mxu1 }
 0x21a   : > { %v597_v56 = vrot.slane %v589_v50, %v2324_v40  ;;  %v604_v57 = vrot.slane %v590_v51, %v2324_v40 }
 0x21c   : > { %v605_v59 = vcombine.low %v597_v56, %v604_v57 }
 0x21e   : > { %v607_v60 = vadd.f32 %v605_v59, %v501_v58 }
 0x220   : > { %v1779_v61 = vmul.f32 -1.442695, %v607_v60  ;;  %v615_v62 = vrot.slane %v607_v60, 2  ;;  %v626_v33 = vrot.slane %v607_v60, 6  ;;  %v623_v36 = vrot.slane %v607_v60, 4 }
 0x222   : > { %1925 = vpow2.f32 %v1779_v61  ;;  %v1780_v63 = vmul.f32 -1.442695, %v615_v62  ;;  %v1781_v34 = vmul.f32 -1.442695, %v626_v33 }
 0x224   : > { %1927 = vpow2.f32 %v1780_v63 }
 0x225   : > { %1929 = vpow2.f32 %v1781_v34  ;;  %v647_v34 = vld [vmem:[%s646_s23] sm:$0xff]  ;;  %s1832_s23 = sshll.u32 %s2627_s21, 3 }
 0x226   : > { %s1084_s24 = scalar_lea.vmem %s2322_s27, %s1832_s23 }
 0x22c   : > { %v1926_v35 = vpop.eup %1925 }
 0x22d   : > { %v611_v37 = vadd.f32 1.0, %v1926_v35 }
 0x22e   : > { %v1928_v38 = vpop.eup %1927 }
 0x22f   : > { %1931 = vrcp.f32 %v611_v37  ;;  %v620_v39 = vadd.f32 1.0, %v1928_v38  ;;  %v1930_v42 = vpop.eup %1929 }
 0x230   : > { %1933 = vtanh.f32 %v623_v36  ;;  %v631_v46 = vadd.f32 1.0, %v1930_v42 }
 0x231   : > { %1935 = vrcp.f32 %v620_v39 }
 0x232   : > { %1937 = vrcp.f32 %v631_v46 }
 0x239   : > { %v1932_v43 = vpop.eup %1931 }
 0x23a   : > { %v1934_v44 = vpop.eup %1933 }
 0x23b   : > { %v1936_v45 = vpop.eup %1935  ;;  %v635_v48 = vmul.f32 %v1934_v44, %v1932_v43 }
 0x23c   : > { %v634_v47 = vmul.f32 %v1936_v45, %v2329_v41  ;;  %v1938_v50 = vpop.eup %1937 }
 0x23e   : > { %v2388_v49 = vadd.f32 %v635_v48, %v634_v47 }
 0x240   : > { %1939 = vtanh.f32 %v2388_v49 }
 0x24a   : > { %v1940_v51 = vpop.eup %1939 }
 0x24b   : > { %v638_v52 = vmul.f32 %v1940_v51, %v1938_v50 }
 0x24d   : > { %641 = vst [vmem:[%s640_s18] sm:$0x3] %v638_v52  ;;  %v648_v53 = vpack.c.bf16 %v638_v52, %v638_v52  ;;  %s1802_s18 = sshll.u32 %s2525_s11, 1  ;;  %s2684_s11 = sadd.s32 %s1372_s9, %s2373_s7 }
 0x24e   : > { %s1078_s19 = scalar_lea.vmem %s2334_s4, %s1802_s18 [#allocation2]  ;;  %s1834_s14 = sshll.u32 %s2684_s11, 3 }
 0x24f   : > { %682 = vmatmul.mubr.bf16.vlgmr.msra.gmra.mrb[8].mxu0 %v648_v53  ;;  %723 = vmatmul.mubr.bf16.vlgmr.msra.gmra.mrb[8].mxu1 %v648_v53 }
 0x250   : > { %796 = vmatpush1.bf16.msra.mxu0 %v2159_v3  ;;  %837 = vmatpush1.bf16.msra.mxu1 %v2162_v4 }
 0x251   : > { %797 = vmatprep.subr.bf16.mxu0 %v2166_v5  ;;  %838 = vmatprep.subr.bf16.mxu1 %v2171_v6 }
 0x252   : > { %827 = vmatprep.mubr.bf16.mxu0 %v2093_v0  ;;  %868 = vmatprep.mubr.bf16.mxu1 %v2093_v0 }
 0x254   : > { %798 = vmatpush1.bf16.msra.mxu0 %v2174_v7  ;;  %839 = vmatpush1.bf16.msra.mxu1 %v2178_v8 }
 0x255   : > { %799 = vmatprep.subr.bf16.mxu0 %v2182_v9  ;;  %840 = vmatprep.subr.bf16.mxu1 %v2185_v10 }
 0x258   : > { %800 = vmatpush1.bf16.msra.mxu0 %v2188_v11  ;;  %841 = vmatpush1.bf16.msra.mxu1 %v2191_v12 }
 0x259   : > { %801 = vmatprep.subr.bf16.mxu0 %v2196_v13  ;;  %842 = vmatprep.subr.bf16.mxu1 %v2201_v14 }
 0x25c   : > { %802 = vmatpush1.bf16.msra.mxu0 %v2204_v15  ;;  %843 = vmatpush1.bf16.msra.mxu1 %v2209_v16 }
 0x25d   : > { %803 = vmatprep.subr.bf16.mxu0 %v2212_v17  ;;  %844 = vmatprep.subr.bf16.mxu1 %v2217_v18 }
 0x260   : > { %804 = vmatpush1.bf16.msra.mxu0 %v2220_v19  ;;  %845 = vmatpush1.bf16.msra.mxu1 %v2223_v20 }
 0x261   : > { %805 = vmatprep.subr.bf16.mxu0 %v2228_v21  ;;  %846 = vmatprep.subr.bf16.mxu1 %v2233_v22 }
 0x264   : > { %806 = vmatpush1.bf16.msra.mxu0 %v2238_v23  ;;  %847 = vmatpush1.bf16.msra.mxu1 %v2241_v24 }
 0x265   : > { %807 = vmatprep.subr.bf16.mxu0 %v2246_v25  ;;  %848 = vmatprep.subr.bf16.mxu1 %v2249_v26 }
 0x268   : > { %808 = vmatpush1.bf16.msra.mxu0 %v2254_v27  ;;  %849 = vmatpush1.bf16.msra.mxu1 %v2257_v28 }
 0x269   : > { %809 = vmatprep.subr.bf16.mxu0 %v2262_v29  ;;  %850 = vmatprep.subr.bf16.mxu1 %v2265_v30 }
 0x26c   : > { %810 = vmatpush1.bf16.msra.mxu0 %v2270_v31  ;;  %851 = vmatpush1.bf16.msra.mxu1 %v2273_v32 }
 0x26d   : > { %941 = vmatprep.subr.bf16.mxu0 %v2152_v1  ;;  %982 = vmatprep.subr.bf16.mxu1 %v2155_v2 }
 0x322   : > { %v683_v41 = vpop.f32.mrb[8].mxu0  ;;  %v724_v54 = vpop.f32.mrb[8].mxu1 }
 0x323   : > { %v685_v55 = vpop.f32.mrb[9].mxu0  ;;  %v726_v56 = vpop.f32.mrb[9].mxu1 }
 0x324   : > { %v735_v57 = vcombine.low %v683_v41, %v685_v55  ;;  %v736_v58 = vcombine.low %v724_v54, %v726_v56  ;;  %v687_v59 = vpop.f32.mrb[10].mxu0  ;;  %v728_v60 = vpop.f32.mrb[10].mxu1 }
 0x325   : > { %v688_v61 = vpop.f32.mrb[11].mxu0  ;;  %v729_v62 = vpop.f32.mrb[11].mxu1 }
 0x326   : > { %v743_v63 = vrot.slane %v735_v57, %v2324_v40  ;;  %v750_v33 = vrot.slane %v736_v58, %v2324_v40 }
 0x328   : > { %v751_v35 = vcombine.low %v743_v63, %v750_v33 }
 0x32a   : > { %v753_v36 = vadd.f32 %v751_v35, %v647_v34 }
 0x32c   : > { %v1786_v37 = vmul.f32 -1.442695, %v753_v36  ;;  %v761_v38 = vrot.slane %v753_v36, 2  ;;  %v772_v42 = vrot.slane %v753_v36, 6  ;;  %v769_v45 = vrot.slane %v753_v36, 4 }
 0x32e   : > { %1941 = vpow2.f32 %v1786_v37  ;;  %v1787_v39 = vmul.f32 -1.442695, %v761_v38  ;;  %v1788_v43 = vmul.f32 -1.442695, %v772_v42 }
 0x330   : > { %1943 = vpow2.f32 %v1787_v39 }
 0x331   : > { %1945 = vpow2.f32 %v1788_v43  ;;  %v793_v43 = vld [vmem:[%s792_s30] sm:$0xff]  ;;  %s1833_s30 = sshll.u32 %s2673_s29, 3 }
 0x332   : > { %s1230_s3 = scalar_lea.vmem %s2322_s27, %s1833_s30 }
 0x338   : > { %v1942_v44 = vpop.eup %1941 }
 0x339   : > { %v757_v46 = vadd.f32 1.0, %v1942_v44 }
 0x33a   : > { %v1944_v47 = vpop.eup %1943 }
 0x33b   : > { %1947 = vrcp.f32 %v757_v46  ;;  %v766_v48 = vadd.f32 1.0, %v1944_v47  ;;  %v1946_v50 = vpop.eup %1945 }
 0x33c   : > { %1949 = vtanh.f32 %v769_v45  ;;  %v777_v41 = vadd.f32 1.0, %v1946_v50 }
 0x33d   : > { %1951 = vrcp.f32 %v766_v48 }
 0x33e   : > { %1953 = vrcp.f32 %v777_v41 }
 0x345   : > { %v1948_v51 = vpop.eup %1947 }
 0x346   : > { %v1950_v52 = vpop.eup %1949 }
 0x347   : > { %v1952_v53 = vpop.eup %1951  ;;  %v781_v55 = vmul.f32 %v1950_v52, %v1948_v51 }
 0x348   : > { %v780_v54 = vmul.f32 %v1952_v53, %v2388_v49  ;;  %v1954_v57 = vpop.eup %1953 }
 0x34a   : > { %v2436_v56 = vadd.f32 %v781_v55, %v780_v54 }
 0x34c   : > { %1955 = vtanh.f32 %v2436_v56 }
 0x356   : > { %v1956_v58 = vpop.eup %1955 }
 0x357   : > { %v784_v59 = vmul.f32 %v1956_v58, %v1954_v57 }
 0x359   : > { %787 = vst [vmem:[%s786_s25] sm:$0x3] %v784_v59  ;;  %v794_v60 = vpack.c.bf16 %v784_v59, %v784_v59  ;;  %s1808_s25 = sshll.u32 %s2627_s21, 1 }
 0x35a   : > { %s1224_s26 = scalar_lea.vmem %s2334_s4, %s1808_s25 [#allocation2] }
 0x35b   : > { %828 = vmatmul.mubr.bf16.vlgmr.msra.gmra.mrb[12].mxu0 %v794_v60  ;;  %869 = vmatmul.mubr.bf16.vlgmr.msra.gmra.mrb[12].mxu1 %v794_v60 }
 0x35c   : > { %942 = vmatpush1.bf16.msra.mxu0 %v2159_v3  ;;  %983 = vmatpush1.bf16.msra.mxu1 %v2162_v4 }
 0x35d   : > { %943 = vmatprep.subr.bf16.mxu0 %v2166_v5  ;;  %984 = vmatprep.subr.bf16.mxu1 %v2171_v6 }
 0x35e   : > { %973 = vmatprep.mubr.bf16.mxu0 %v2093_v0  ;;  %1014 = vmatprep.mubr.bf16.mxu1 %v2093_v0 }
 0x360   : > { %944 = vmatpush1.bf16.msra.mxu0 %v2174_v7  ;;  %985 = vmatpush1.bf16.msra.mxu1 %v2178_v8 }
 0x361   : > { %945 = vmatprep.subr.bf16.mxu0 %v2182_v9  ;;  %986 = vmatprep.subr.bf16.mxu1 %v2185_v10 }
 0x364   : > { %946 = vmatpush1.bf16.msra.mxu0 %v2188_v11  ;;  %987 = vmatpush1.bf16.msra.mxu1 %v2191_v12 }
 0x365   : > { %947 = vmatprep.subr.bf16.mxu0 %v2196_v13  ;;  %988 = vmatprep.subr.bf16.mxu1 %v2201_v14 }
 0x368   : > { %948 = vmatpush1.bf16.msra.mxu0 %v2204_v15  ;;  %989 = vmatpush1.bf16.msra.mxu1 %v2209_v16 }
 0x369   : > { %949 = vmatprep.subr.bf16.mxu0 %v2212_v17  ;;  %990 = vmatprep.subr.bf16.mxu1 %v2217_v18 }
 0x36c   : > { %950 = vmatpush1.bf16.msra.mxu0 %v2220_v19  ;;  %991 = vmatpush1.bf16.msra.mxu1 %v2223_v20 }
 0x36d   : > { %951 = vmatprep.subr.bf16.mxu0 %v2228_v21  ;;  %992 = vmatprep.subr.bf16.mxu1 %v2233_v22 }
 0x370   : > { %952 = vmatpush1.bf16.msra.mxu0 %v2238_v23  ;;  %993 = vmatpush1.bf16.msra.mxu1 %v2241_v24 }
 0x371   : > { %953 = vmatprep.subr.bf16.mxu0 %v2246_v25  ;;  %994 = vmatprep.subr.bf16.mxu1 %v2249_v26 }
 0x374   : > { %954 = vmatpush1.bf16.msra.mxu0 %v2254_v27  ;;  %995 = vmatpush1.bf16.msra.mxu1 %v2257_v28 }
 0x375   : > { %955 = vmatprep.subr.bf16.mxu0 %v2262_v29  ;;  %996 = vmatprep.subr.bf16.mxu1 %v2265_v30 }
 0x378   : > { %956 = vmatpush1.bf16.msra.mxu0 %v2270_v31  ;;  %997 = vmatpush1.bf16.msra.mxu1 %v2273_v32 }
 0x379   : > { %1087 = vmatprep.subr.bf16.mxu0 %v2152_v1  ;;  %1128 = vmatprep.subr.bf16.mxu1 %v2155_v2 }
 0x42e   : > { %v829_v49 = vpop.f32.mrb[12].mxu0  ;;  %v870_v61 = vpop.f32.mrb[12].mxu1 }
 0x42f   : > { %v831_v62 = vpop.f32.mrb[13].mxu0  ;;  %v872_v63 = vpop.f32.mrb[13].mxu1 }
 0x430   : > { %v881_v33 = vcombine.low %v829_v49, %v831_v62  ;;  %v882_v34 = vcombine.low %v870_v61, %v872_v63  ;;  %v833_v35 = vpop.f32.mrb[14].mxu0  ;;  %v874_v36 = vpop.f32.mrb[14].mxu1 }
 0x431   : > { %v834_v37 = vpop.f32.mrb[15].mxu0  ;;  %v875_v38 = vpop.f32.mrb[15].mxu1 }
 0x432   : > { %v889_v39 = vrot.slane %v881_v33, %v2324_v40  ;;  %v896_v42 = vrot.slane %v882_v34, %v2324_v40 }
 0x434   : > { %v897_v44 = vcombine.low %v889_v39, %v896_v42 }
 0x436   : > { %v899_v45 = vadd.f32 %v897_v44, %v793_v43 }
 0x438   : > { %v1792_v46 = vmul.f32 -1.442695, %v899_v45  ;;  %v907_v47 = vrot.slane %v899_v45, 2  ;;  %v918_v50 = vrot.slane %v899_v45, 6  ;;  %v915_v53 = vrot.slane %v899_v45, 4 }
 0x43a   : > { %1957 = vpow2.f32 %v1792_v46  ;;  %v1793_v48 = vmul.f32 -1.442695, %v907_v47  ;;  %v1794_v51 = vmul.f32 -1.442695, %v918_v50 }
 0x43c   : > { %1959 = vpow2.f32 %v1793_v48 }
 0x43d   : > { %1961 = vpow2.f32 %v1794_v51 }
 0x444   : > { %v1958_v52 = vpop.eup %1957 }
 0x445   : > { %v903_v41 = vadd.f32 1.0, %v1958_v52 }
 0x446   : > { %v1960_v54 = vpop.eup %1959 }
 0x447   : > { %1963 = vrcp.f32 %v903_v41  ;;  %v912_v55 = vadd.f32 1.0, %v1960_v54  ;;  %v1962_v57 = vpop.eup %1961 }
 0x448   : > { %1965 = vtanh.f32 %v915_v53  ;;  %v923_v49 = vadd.f32 1.0, %v1962_v57  ;;  %v2542_v57 = vld [vmem:[%s2149_s22 + $0x8] ss:$16 sps:$4 sm:$0xff]  }
 0x449   : > { %1967 = vrcp.f32 %v912_v55  ;;  %v2538_v55 = vld [vmem:[%s2149_s22] ss:$16 sps:$4 sm:$0xff]  }
 0x44a   : > { %1969 = vrcp.f32 %v923_v49  ;;  %v2560_v49 = vld [vmem:[%s2149_s22 + $0x28] ss:$16 sps:$4 sm:$0xff]  }
 0x451   : > { %v1964_v58 = vpop.eup %1963 }
 0x452   : > { %v1966_v59 = vpop.eup %1965 }
 0x453   : > { %v1968_v60 = vpop.eup %1967  ;;  %v927_v62 = vmul.f32 %v1966_v59, %v1964_v58  ;;  %v2546_v58 = vld [vmem:[%s2149_s22 + $0x24] ss:$16 sps:$4 sm:$0xff]   ;;  %v2550_v59 = vld [vmem:[%s2149_s22 + $0x2c] ss:$16 sps:$4 sm:$0xff]  }
 0x454   : > { %v926_v61 = vmul.f32 %v1968_v60, %v2436_v56  ;;  %v1970_v33 = vpop.eup %1969  ;;  %v2556_v60 = vld [vmem:[%s2149_s22 + $0x20] ss:$16 sps:$4 sm:$0xff]  }
 0x456   : > { %v2484_v63 = vadd.f32 %v927_v62, %v926_v61  ;;  %v2564_v61 = vld [vmem:[%s2149_s22 + $0x44] ss:$16 sps:$4 sm:$0xff]   ;;  %v2568_v62 = vld [vmem:[%s2149_s22 + $0x4c] ss:$16 sps:$4 sm:$0xff]  }
 0x458   : > { %1971 = vtanh.f32 %v2484_v63 }
 0x462   : > { %v1972_v34 = vpop.eup %1971 }
 0x463   : > { %v930_v35 = vmul.f32 %v1972_v34, %v1970_v33  ;;  %v2576_v33 = vld [vmem:[%s2149_s22 + $0x48] ss:$16 sps:$4 sm:$0xff]   ;;  %v2580_v34 = vld [vmem:[%s2149_s22 + $0x64] ss:$16 sps:$4 sm:$0xff]  }
 0x465   : > { %933 = vst [vmem:[%s932_s5] sm:$0x3] %v930_v35  ;;  %v940_v36 = vpack.c.bf16 %v930_v35, %v930_v35  ;;  %v2584_v35 = vld [vmem:[%s2149_s22 + $0x6c] ss:$16 sps:$4 sm:$0xff]  }
 0x467   : > { %974 = vmatmul.mubr.bf16.vlgmr.msra.gmra.mrb[16].mxu0 %v940_v36  ;;  %1015 = vmatmul.mubr.bf16.vlgmr.msra.gmra.mrb[16].mxu1 %v940_v36  ;;  %v2588_v36 = vld [vmem:[%s2149_s22 + $0x60] ss:$16 sps:$4 sm:$0xff]  }
 0x468   : > { %1088 = vmatpush1.bf16.msra.mxu0 %v2159_v3  ;;  %1129 = vmatpush1.bf16.msra.mxu1 %v2162_v4 }
 0x469   : > { %1089 = vmatprep.subr.bf16.mxu0 %v2166_v5  ;;  %1130 = vmatprep.subr.bf16.mxu1 %v2171_v6 }
 0x46a   : > { %1119 = vmatprep.mubr.bf16.mxu0 %v2093_v0  ;;  %1160 = vmatprep.mubr.bf16.mxu1 %v2093_v0 }
 0x46c   : > { %1090 = vmatpush1.bf16.msra.mxu0 %v2174_v7  ;;  %1131 = vmatpush1.bf16.msra.mxu1 %v2178_v8 }
 0x46d   : > { %1091 = vmatprep.subr.bf16.mxu0 %v2182_v9  ;;  %1132 = vmatprep.subr.bf16.mxu1 %v2185_v10 }
 0x470   : > { %1092 = vmatpush1.bf16.msra.mxu0 %v2188_v11  ;;  %1133 = vmatpush1.bf16.msra.mxu1 %v2191_v12 }
 0x471   : > { %1093 = vmatprep.subr.bf16.mxu0 %v2196_v13  ;;  %1134 = vmatprep.subr.bf16.mxu1 %v2201_v14  ;;  %v939_v13 = vld [vmem:[%s938_s15] sm:$0xff]  ;;  %s1376_s15 = scalar_lea.vmem %s2322_s27, %s1834_s14  ;;  %s1820_s27 = sshll.u32 %s2684_s11, 1 }
 0x472   : > { %s1516_s7 = scalar_lea.vmem %s2334_s4, %s1820_s27 [#allocation2] }
 0x474   : > { %1094 = vmatpush1.bf16.msra.mxu0 %v2204_v15  ;;  %1135 = vmatpush1.bf16.msra.mxu1 %v2209_v16 }
 0x475   : > { %1095 = vmatprep.subr.bf16.mxu0 %v2212_v17  ;;  %1136 = vmatprep.subr.bf16.mxu1 %v2217_v18 }
 0x478   : > { %1096 = vmatpush1.bf16.msra.mxu0 %v2220_v19  ;;  %1137 = vmatpush1.bf16.msra.mxu1 %v2223_v20 }
 0x479   : > { %1097 = vmatprep.subr.bf16.mxu0 %v2228_v21  ;;  %1138 = vmatprep.subr.bf16.mxu1 %v2233_v22 }
 0x47c   : > { %1098 = vmatpush1.bf16.msra.mxu0 %v2238_v23  ;;  %1139 = vmatpush1.bf16.msra.mxu1 %v2241_v24 }
 0x47d   : > { %1099 = vmatprep.subr.bf16.mxu0 %v2246_v25  ;;  %1140 = vmatprep.subr.bf16.mxu1 %v2249_v26 }
 0x480   : > { %1100 = vmatpush1.bf16.msra.mxu0 %v2254_v27  ;;  %1141 = vmatpush1.bf16.msra.mxu1 %v2257_v28 }
 0x481   : > { %1101 = vmatprep.subr.bf16.mxu0 %v2262_v29  ;;  %1142 = vmatprep.subr.bf16.mxu1 %v2265_v30 }
 0x484   : > { %1102 = vmatpush1.bf16.msra.mxu0 %v2270_v31  ;;  %1143 = vmatpush1.bf16.msra.mxu1 %v2273_v32 }
 0x485   : > { %1233 = vmatprep.subr.bf16.mxu0 %v2152_v1  ;;  %1274 = vmatprep.subr.bf16.mxu1 %v2155_v2 }
 0x53a   : > { %v975_v3 = vpop.f32.mrb[16].mxu0  ;;  %v1016_v4 = vpop.f32.mrb[16].mxu1 }
 0x53b   : > { %v977_v5 = vpop.f32.mrb[17].mxu0  ;;  %v1018_v6 = vpop.f32.mrb[17].mxu1 }
 0x53c   : > { %v1027_v7 = vcombine.low %v975_v3, %v977_v5  ;;  %v1028_v8 = vcombine.low %v1016_v4, %v1018_v6  ;;  %v979_v9 = vpop.f32.mrb[18].mxu0  ;;  %v1020_v10 = vpop.f32.mrb[18].mxu1  ;;  %v2592_v3 = vld [vmem:[%s2149_s22 + $0x68] ss:$16 sps:$4 sm:$0xff]   ;;  %v2596_v4 = vld [vmem:[%s2149_s22 + $0x84] ss:$16 sps:$4 sm:$0xff]  }
 0x53d   : > { %v980_v11 = vpop.f32.mrb[19].mxu0  ;;  %v1021_v12 = vpop.f32.mrb[19].mxu1  ;;  %v2600_v5 = vld [vmem:[%s2149_s22 + $0x8c] ss:$16 sps:$4 sm:$0xff]   ;;  %v2604_v6 = vld [vmem:[%s2149_s22 + $0x80] ss:$16 sps:$4 sm:$0xff]  }
 0x53e   : > { %v1035_v1 = vrot.slane %v1027_v7, %v2324_v40  ;;  %v1042_v2 = vrot.slane %v1028_v8, %v2324_v40  ;;  %v2608_v7 = vld [vmem:[%s2149_s22 + $0x88] ss:$16 sps:$4 sm:$0xff]   ;;  %v1085_v10 = vld [vmem:[%s1084_s24] sm:$0xff] }
 0x540   : > { %v1043_v14 = vcombine.low %v1035_v1, %v1042_v2 }
 0x542   : > { %v1045_v15 = vadd.f32 %v1043_v14, %v939_v13 }
 0x544   : > { %v1799_v16 = vmul.f32 -1.442695, %v1045_v15  ;;  %v1053_v17 = vrot.slane %v1045_v15, 2  ;;  %v1064_v19 = vrot.slane %v1045_v15, 6  ;;  %v1061_v37 = vrot.slane %v1045_v15, 4 }
 0x546   : > { %1973 = vpow2.f32 %v1799_v16  ;;  %v1800_v18 = vmul.f32 -1.442695, %v1053_v17  ;;  %v1801_v20 = vmul.f32 -1.442695, %v1064_v19 }
 0x548   : > { %1975 = vpow2.f32 %v1800_v18 }
 0x549   : > { %1977 = vpow2.f32 %v1801_v20 }
 0x550   : > { %v1974_v56 = vpop.eup %1973 }
 0x551   : > { %v1049_v38 = vadd.f32 1.0, %v1974_v56 }
 0x552   : > { %v1976_v39 = vpop.eup %1975 }
 0x553   : > { %1979 = vrcp.f32 %v1049_v38  ;;  %v1058_v42 = vadd.f32 1.0, %v1976_v39  ;;  %v1978_v43 = vpop.eup %1977 }
 0x554   : > { %1981 = vtanh.f32 %v1061_v37  ;;  %v1069_v47 = vadd.f32 1.0, %v1978_v43 }
 0x555   : > { %1983 = vrcp.f32 %v1058_v42 }
 0x556   : > { %1985 = vrcp.f32 %v1069_v47 }
 0x55d   : > { %v1980_v44 = vpop.eup %1979 }
 0x55e   : > { %v1982_v45 = vpop.eup %1981 }
 0x55f   : > { %v1984_v46 = vpop.eup %1983  ;;  %v1073_v50 = vmul.f32 %v1982_v45, %v1980_v44 }
 0x560   : > { %v1072_v48 = vmul.f32 %v1984_v46, %v2484_v63  ;;  %v1986_v52 = vpop.eup %1985  ;;  %v2572_v63 = vld [vmem:[%s2149_s22 + $0x40] ss:$16 sps:$4 sm:$0xff]  }
 0x562   : > { %v2532_v51 = vadd.f32 %v1073_v50, %v1072_v48 }
 0x564   : > { %1987 = vtanh.f32 %v2532_v51 }
 0x56e   : > { %v1988_v53 = vpop.eup %1987 }
 0x56f   : > { %v1076_v41 = vmul.f32 %v1988_v53, %v1986_v52  ;;  %v2059_v52 = vld [vmem:[%s2149_s22 + $0xa0] ss:$16 sps:$4 sm:$0xff]   ;;  %v2060_v53 = vld [vmem:[%s2149_s22 + $0xa8] ss:$16 sps:$4 sm:$0xff]  }
 0x571   : > { %1079 = vst [vmem:[%s1078_s19] sm:$0x3] %v1076_v41  ;;  %v1086_v54 = vpack.c.bf16 %v1076_v41, %v1076_v41  ;;  %v2061_v41 = vld [vmem:[%s2149_s22 + $0xc4] ss:$16 sps:$4 sm:$0xff]   ;;  %s1526_s19 = scalar_lea.vmem (%p2135_p4), %s2719_s2, %s1776_s6 }
 0x573   : > { %1120 = vmatmul.mubr.bf16.vlgmr.msra.gmra.mrb[20].mxu0 %v1086_v54  ;;  %1161 = vmatmul.mubr.bf16.vlgmr.msra.gmra.mrb[20].mxu1 %v1086_v54  ;;  %v2062_v54 = vld [vmem:[%s2149_s22 + $0xcc] ss:$16 sps:$4 sm:$0xff]  }
 0x574   : > { %1234 = vmatpush1.bf16.msra.mxu0 %v2538_v55  ;;  %1275 = vmatpush1.bf16.msra.mxu1 %v2542_v57 }
 0x575   : > { %1235 = vmatprep.subr.bf16.mxu0 %v2546_v58  ;;  %1276 = vmatprep.subr.bf16.mxu1 %v2550_v59 }
 0x576   : > { %1265 = vmatprep.mubr.bf16.mxu0 %v2093_v0  ;;  %1306 = vmatprep.mubr.bf16.mxu1 %v2093_v0 }
 0x578   : > { %1236 = vmatpush1.bf16.msra.mxu0 %v2556_v60  ;;  %1277 = vmatpush1.bf16.msra.mxu1 %v2560_v49 }
 0x579   : > { %1237 = vmatprep.subr.bf16.mxu0 %v2564_v61  ;;  %1278 = vmatprep.subr.bf16.mxu1 %v2568_v62 }
 0x57c   : > { %1238 = vmatpush1.bf16.msra.mxu0 %v2572_v63  ;;  %1279 = vmatpush1.bf16.msra.mxu1 %v2576_v33 }
 0x57d   : > { %1239 = vmatprep.subr.bf16.mxu0 %v2580_v34  ;;  %1280 = vmatprep.subr.bf16.mxu1 %v2584_v35 }
 0x580   : > { %1240 = vmatpush1.bf16.msra.mxu0 %v2588_v36  ;;  %1281 = vmatpush1.bf16.msra.mxu1 %v2592_v3 }
 0x581   : > { %1241 = vmatprep.subr.bf16.mxu0 %v2596_v4  ;;  %1282 = vmatprep.subr.bf16.mxu1 %v2600_v5 }
 0x584   : > { %1242 = vmatpush1.bf16.msra.mxu0 %v2604_v6  ;;  %1283 = vmatpush1.bf16.msra.mxu1 %v2608_v7 }
 0x585   : > { %1243 = vmatprep.subr.bf16.mxu0 %v2228_v21  ;;  %1284 = vmatprep.subr.bf16.mxu1 %v2233_v22  ;;  %v2055_v21 = vld [vmem:[%s2149_s22 + $0x4] ss:$16 sps:$4 sm:$0xff]   ;;  %v2056_v22 = vld [vmem:[%s2149_s22 + $0xc] ss:$16 sps:$4 sm:$0xff]  }
 0x588   : > { %1244 = vmatpush1.bf16.msra.mxu0 %v2238_v23  ;;  %1285 = vmatpush1.bf16.msra.mxu1 %v2241_v24 }
 0x589   : > { %1245 = vmatprep.subr.bf16.mxu0 %v2246_v25  ;;  %1286 = vmatprep.subr.bf16.mxu1 %v2249_v26 }
 0x58c   : > { %1246 = vmatpush1.bf16.msra.mxu0 %v2254_v27  ;;  %1287 = vmatpush1.bf16.msra.mxu1 %v2257_v28 }
 0x58d   : > { %1247 = vmatprep.subr.bf16.mxu0 %v2262_v29  ;;  %1288 = vmatprep.subr.bf16.mxu1 %v2265_v30 }
 0x590   : > { %1248 = vmatpush1.bf16.msra.mxu0 %v2270_v31  ;;  %1289 = vmatpush1.bf16.msra.mxu1 %v2273_v32 }
 0x591   : > { %1379 = vmatprep.subr.bf16.mxu0 %v2055_v21  ;;  %1420 = vmatprep.subr.bf16.mxu1 %v2056_v22  ;;  %v1231_v21 = vld [vmem:[%s1230_s3] sm:$0xff] }
 0x646   : > { %v1121_v23 = vpop.f32.mrb[20].mxu0  ;;  %v1162_v24 = vpop.f32.mrb[20].mxu1 }
 0x647   : > { %v1123_v25 = vpop.f32.mrb[21].mxu0  ;;  %v1164_v26 = vpop.f32.mrb[21].mxu1 }
 0x648   : > { %v1173_v27 = vcombine.low %v1121_v23, %v1123_v25  ;;  %v1174_v28 = vcombine.low %v1162_v24, %v1164_v26  ;;  %v1125_v29 = vpop.f32.mrb[22].mxu0  ;;  %v1166_v30 = vpop.f32.mrb[22].mxu1 }
 0x649   : > { %v1126_v31 = vpop.f32.mrb[23].mxu0  ;;  %v1167_v32 = vpop.f32.mrb[23].mxu1 }
 0x64a   : > { %v1181_v8 = vrot.slane %v1173_v27, %v2324_v40  ;;  %v1188_v9 = vrot.slane %v1174_v28, %v2324_v40 }
 0x64c   : > { %v1189_v11 = vcombine.low %v1181_v8, %v1188_v9 }
 0x64e   : > { %v1191_v12 = vadd.f32 %v1189_v11, %v1085_v10 }
 0x650   : > { %v1805_v1 = vmul.f32 -1.442695, %v1191_v12  ;;  %v1199_v2 = vrot.slane %v1191_v12, 2  ;;  %v1210_v14 = vrot.slane %v1191_v12, 6  ;;  %v1207_v17 = vrot.slane %v1191_v12, 4 }
 0x652   : > { %1989 = vpow2.f32 %v1805_v1  ;;  %v1806_v13 = vmul.f32 -1.442695, %v1199_v2  ;;  %v1807_v15 = vmul.f32 -1.442695, %v1210_v14 }
 0x654   : > { %1991 = vpow2.f32 %v1806_v13 }
 0x655   : > { %1993 = vpow2.f32 %v1807_v15 }
 0x65c   : > { %v1990_v16 = vpop.eup %1989 }
 0x65d   : > { %v1195_v18 = vadd.f32 1.0, %v1990_v16 }
 0x65e   : > { %v1992_v19 = vpop.eup %1991 }
 0x65f   : > { %1995 = vrcp.f32 %v1195_v18  ;;  %v1204_v20 = vadd.f32 1.0, %v1992_v19  ;;  %v1994_v56 = vpop.eup %1993 }
 0x660   : > { %1997 = vtanh.f32 %v1207_v17  ;;  %v1215_v42 = vadd.f32 1.0, %v1994_v56 }
 0x661   : > { %1999 = vrcp.f32 %v1204_v20 }
 0x662   : > { %2001 = vrcp.f32 %v1215_v42 }
 0x669   : > { %v1996_v37 = vpop.eup %1995 }
 0x66a   : > { %v1998_v38 = vpop.eup %1997 }
 0x66b   : > { %v2000_v39 = vpop.eup %1999  ;;  %v1219_v44 = vmul.f32 %v1998_v38, %v1996_v37 }
 0x66c   : > { %v1218_v43 = vmul.f32 %v2000_v39, %v2532_v51  ;;  %v2002_v46 = vpop.eup %2001  ;;  %v2058_v51 = vld [vmem:[%s2149_s22 + $0xac] ss:$16 sps:$4 sm:$0xff]  }
 0x66e   : > { %v2634_v45 = vadd.f32 %v1219_v44, %v1218_v43 }
 0x670   : > { %2003 = vtanh.f32 %v2634_v45 }
 0x67a   : > { %v2004_v47 = vpop.eup %2003 }
 0x67b   : > { %v1222_v48 = vmul.f32 %v2004_v47, %v2002_v46 }
 0x67d   : > { %1225 = vst [vmem:[%s1224_s26] sm:$0x3] %v1222_v48  ;;  %v1232_v50 = vpack.c.bf16 %v1222_v48, %v1222_v48  ;;  %v1377_v48 = vld [vmem:[%s1376_s15] sm:$0xff] }
 0x67f   : > { %1266 = vmatmul.mubr.bf16.vlgmr.msra.gmra.mrb[24].mxu0 %v1232_v50  ;;  %1307 = vmatmul.mubr.bf16.vlgmr.msra.gmra.mrb[24].mxu1 %v1232_v50 }
 0x680   : > { %1380 = vmatpush1.bf16.msra.mxu0 %v2538_v55  ;;  %1421 = vmatpush1.bf16.msra.mxu1 %v2542_v57  ;;  %v2063_v55 = vld [vmem:[%s2149_s22 + $0xc0] ss:$16 sps:$4 sm:$0xff]   ;;  %v2064_v57 = vld [vmem:[%s2149_s22 + $0xc8] ss:$16 sps:$4 sm:$0xff]  }
 0x681   : > { %1381 = vmatprep.subr.bf16.mxu0 %v2546_v58  ;;  %1422 = vmatprep.subr.bf16.mxu1 %v2550_v59  ;;  %v2065_v58 = vld [vmem:[%s2149_s22 + $0xe4] ss:$16 sps:$4 sm:$0xff]   ;;  %v2066_v59 = vld [vmem:[%s2149_s22 + $0xec] ss:$16 sps:$4 sm:$0xff]  }
 0x682   : > { %1411 = vmatprep.mubr.bf16.mxu0 %v2093_v0  ;;  %1452 = vmatprep.mubr.bf16.mxu1 %v2093_v0  ;;  %v2057_v0 = vld [vmem:[%s2149_s22 + $0xa4] ss:$16 sps:$4 sm:$0xff]  }
 0x684   : > { %1382 = vmatpush1.bf16.msra.mxu0 %v2556_v60  ;;  %1423 = vmatpush1.bf16.msra.mxu1 %v2560_v49  ;;  %v2067_v60 = vld [vmem:[%s2149_s22 + $0xe0] ss:$16 sps:$4 sm:$0xff]   ;;  %v2068_v49 = vld [vmem:[%s2149_s22 + $0xe8] ss:$16 sps:$4 sm:$0xff]   ;;  %s1814_s22 = sshll.u32 %s2673_s29, 1 }
 0x685   : > { %1383 = vmatprep.subr.bf16.mxu0 %v2564_v61  ;;  %1424 = vmatprep.subr.bf16.mxu1 %v2568_v62  ;;  %s1370_s5 = scalar_lea.vmem %s2334_s4, %s1814_s22 [#allocation2] }
 0x688   : > { %1384 = vmatpush1.bf16.msra.mxu0 %v2572_v63  ;;  %1425 = vmatpush1.bf16.msra.mxu1 %v2576_v33 }
 0x689   : > { %1385 = vmatprep.subr.bf16.mxu0 %v2580_v34  ;;  %1426 = vmatprep.subr.bf16.mxu1 %v2584_v35 }
 0x68c   : > { %1386 = vmatpush1.bf16.msra.mxu0 %v2588_v36  ;;  %1427 = vmatpush1.bf16.msra.mxu1 %v2592_v3 }
 0x68d   : > { %1387 = vmatprep.subr.bf16.mxu0 %v2596_v4  ;;  %1428 = vmatprep.subr.bf16.mxu1 %v2600_v5 }
 0x690   : > { %1388 = vmatpush1.bf16.msra.mxu0 %v2604_v6  ;;  %1429 = vmatpush1.bf16.msra.mxu1 %v2608_v7 }
 0x691   : > { %1389 = vmatprep.subr.bf16.mxu0 %v2057_v0  ;;  %1430 = vmatprep.subr.bf16.mxu1 %v2058_v51 }
 0x694   : > { %1390 = vmatpush1.bf16.msra.mxu0 %v2059_v52  ;;  %1431 = vmatpush1.bf16.msra.mxu1 %v2060_v53 }
 0x695   : > { %1391 = vmatprep.subr.bf16.mxu0 %v2061_v41  ;;  %1432 = vmatprep.subr.bf16.mxu1 %v2062_v54 }
 0x698   : > { %1392 = vmatpush1.bf16.msra.mxu0 %v2063_v55  ;;  %1433 = vmatpush1.bf16.msra.mxu1 %v2064_v57 }
 0x699   : > { %1393 = vmatprep.subr.bf16.mxu0 %v2065_v58  ;;  %1434 = vmatprep.subr.bf16.mxu1 %v2066_v59 }
 0x69c   : > { %1394 = vmatpush1.bf16.msra.mxu0 %v2067_v60  ;;  %1435 = vmatpush1.bf16.msra.mxu1 %v2068_v49 }
 0x752   : > { %v1267_v61 = vpop.f32.mrb[24].mxu0  ;;  %v1308_v62 = vpop.f32.mrb[24].mxu1 }
 0x753   : > { %v1269_v63 = vpop.f32.mrb[25].mxu0  ;;  %v1310_v33 = vpop.f32.mrb[25].mxu1 }
 0x754   : > { %v1319_v34 = vcombine.low %v1267_v61, %v1269_v63  ;;  %v1320_v35 = vcombine.low %v1308_v62, %v1310_v33  ;;  %v1271_v36 = vpop.f32.mrb[26].mxu0  ;;  %v1312_v3 = vpop.f32.mrb[26].mxu1 }
 0x755   : > { %v1272_v4 = vpop.f32.mrb[27].mxu0  ;;  %v1313_v5 = vpop.f32.mrb[27].mxu1 }
 0x756   : > { %v1327_v6 = vrot.slane %v1319_v34, %v2324_v40  ;;  %v1334_v7 = vrot.slane %v1320_v35, %v2324_v40 }
 0x758   : > { %v1335_v22 = vcombine.low %v1327_v6, %v1334_v7 }
 0x75a   : > { %v1337_v23 = vadd.f32 %v1335_v22, %v1231_v21 }
 0x75c   : > { %v1811_v24 = vmul.f32 -1.442695, %v1337_v23  ;;  %v1345_v25 = vrot.slane %v1337_v23, 2  ;;  %v1356_v27 = vrot.slane %v1337_v23, 6  ;;  %v1353_v30 = vrot.slane %v1337_v23, 4 }
 0x75e   : > { %2005 = vpow2.f32 %v1811_v24  ;;  %v1812_v26 = vmul.f32 -1.442695, %v1345_v25  ;;  %v1813_v28 = vmul.f32 -1.442695, %v1356_v27 }
 0x760   : > { %2007 = vpow2.f32 %v1812_v26 }
 0x761   : > { %2009 = vpow2.f32 %v1813_v28 }
 0x768   : > { %v2006_v29 = vpop.eup %2005 }
 0x769   : > { %v1341_v31 = vadd.f32 1.0, %v2006_v29 }
 0x76a   : > { %v2008_v32 = vpop.eup %2007 }
 0x76b   : > { %2011 = vrcp.f32 %v1341_v31  ;;  %v1350_v8 = vadd.f32 1.0, %v2008_v32  ;;  %v2010_v9 = vpop.eup %2009 }
 0x76c   : > { %2013 = vtanh.f32 %v1353_v30  ;;  %v1361_v1 = vadd.f32 1.0, %v2010_v9 }
 0x76d   : > { %2015 = vrcp.f32 %v1350_v8 }
 0x76e   : > { %2017 = vrcp.f32 %v1361_v1 }
 0x775   : > { %v2012_v10 = vpop.eup %2011 }
 0x776   : > { %v2014_v11 = vpop.eup %2013 }
 0x777   : > { %v2016_v12 = vpop.eup %2015  ;;  %v1365_v13 = vmul.f32 %v2014_v11, %v2012_v10 }
 0x778   : > { %v1364_v2 = vmul.f32 %v2016_v12, %v2634_v45  ;;  %v2018_v15 = vpop.eup %2017 }
 0x77a   : > { %v1366_v14 = vadd.f32 %v1365_v13, %v1364_v2 }
 0x77c   : > { %2019 = vtanh.f32 %v1366_v14 }
 0x786   : > { %v2020_v16 = vpop.eup %2019 }
 0x787   : > { %v1368_v17 = vmul.f32 %v2020_v16, %v2018_v15 }
 0x789   : > { %1371 = vst [vmem:[%s1370_s5] sm:$0x3] %v1368_v17  ;;  %v1378_v18 = vpack.c.bf16 %v1368_v17, %v1368_v17 }
 0x78b   : > { %1412 = vmatmul.mubr.bf16.vlgmr.msra.gmra.mrb[28].mxu0 %v1378_v18  ;;  %1453 = vmatmul.mubr.bf16.vlgmr.msra.gmra.mrb[28].mxu1 %v1378_v18 }
 0x85e   : > { %v1413_v19 = vpop.f32.mrb[28].mxu0  ;;  %v1454_v20 = vpop.f32.mrb[28].mxu1 }
 0x85f   : > { %v1415_v56 = vpop.f32.mrb[29].mxu0  ;;  %v1456_v37 = vpop.f32.mrb[29].mxu1 }
 0x860   : > { %v1465_v38 = vcombine.low %v1413_v19, %v1415_v56  ;;  %v1466_v39 = vcombine.low %v1454_v20, %v1456_v37  ;;  %v1417_v42 = vpop.f32.mrb[30].mxu0  ;;  %v1458_v43 = vpop.f32.mrb[30].mxu1 }
 0x861   : > { %v1418_v44 = vpop.f32.mrb[31].mxu0  ;;  %v1459_v45 = vpop.f32.mrb[31].mxu1 }
 0x862   : > { %v1473_v46 = vrot.slane %v1465_v38, %v2324_v40  ;;  %v1480_v47 = vrot.slane %v1466_v39, %v2324_v40 }
 0x864   : > { %v1481_v50 = vcombine.low %v1473_v46, %v1480_v47 }
 0x866   : > { %v1483_v0 = vadd.f32 %v1481_v50, %v1377_v48 }
 0x868   : > { %v1817_v51 = vmul.f32 -1.442695, %v1483_v0  ;;  %v1491_v52 = vrot.slane %v1483_v0, 2  ;;  %v1502_v41 = vrot.slane %v1483_v0, 6  ;;  %v1499_v57 = vrot.slane %v1483_v0, 4 }
 0x86a   : > { %2021 = vpow2.f32 %v1817_v51  ;;  %v1818_v53 = vmul.f32 -1.442695, %v1491_v52  ;;  %v1819_v54 = vmul.f32 -1.442695, %v1502_v41 }
 0x86c   : > { %2023 = vpow2.f32 %v1818_v53 }
 0x86d   : > { %2025 = vpow2.f32 %v1819_v54 }
 0x874   : > { %v2022_v55 = vpop.eup %2021 }
 0x875   : > { %v1487_v58 = vadd.f32 1.0, %v2022_v55 }
 0x876   : > { %v2024_v59 = vpop.eup %2023 }
 0x877   : > { %2027 = vrcp.f32 %v1487_v58  ;;  %v1496_v60 = vadd.f32 1.0, %v2024_v59  ;;  %v2026_v40 = vpop.eup %2025 }
 0x878   : > { %2029 = vtanh.f32 %v1499_v57  ;;  %v1507_v63 = vadd.f32 1.0, %v2026_v40 }
 0x879   : > { %2031 = vrcp.f32 %v1496_v60 }
 0x87a   : > { %2033 = vrcp.f32 %v1507_v63 }
 0x881   : > { %v2028_v49 = vpop.eup %2027 }
 0x882   : > { %v2030_v61 = vpop.eup %2029 }
 0x883   : > { %v2032_v62 = vpop.eup %2031  ;;  %v1511_v34 = vmul.f32 %v2030_v61, %v2028_v49 }
 0x884   : > { %v1510_v33 = vmul.f32 %v2032_v62, %v1366_v14  ;;  %v2034_v36 = vpop.eup %2033 }
 0x886   : > { %v1512_v35 = vadd.f32 %v1511_v34, %v1510_v33 }
 0x888   : > { %2035 = vtanh.f32 %v1512_v35 }
 0x88f   : > { %1524 = sbr.rel (!%p2135_p4) target bundleno = 2210 (0x8a2), region = 32 }
 0x892   : > { %v2036_v3 = vpop.eup %2035 }
 0x893   : > { %v1514_v4 = vmul.f32 %v2036_v3, %v2034_v36 }
 0x895   : > { %1517 = vst [vmem:[%s1516_s7] sm:$0x3] %v1514_v4 }
 0x89c   : > { %v1542_v5 = vld [vmem:[%s2334_s4] sm:$0x3]  ;;  %v1544_v6 = vld [vmem:[%s2334_s4 + $0x2] sm:$0x3]  ;;  %v1546_v7 = vld [vmem:[%s2334_s4 + $0x4] sm:$0x3] }
 0x89d   : > { %1543 = vst [vmem:[%s1526_s19] sm:$0x3] %v1542_v5  ;;  %1545 = vst [vmem:[%s1526_s19 + $0x4] sm:$0x3] %v1544_v6  ;;  %v1548_v21 = vld [vmem:[%s2334_s4 + $0x6] sm:$0x3] }
 0x89e   : > { %1547 = vst [vmem:[%s1526_s19 + $0x8] sm:$0x3] %v1546_v7  ;;  %v1550_v22 = vld [vmem:[%s2334_s4 + $0x8] sm:$0x3]  ;;  %v1552_v23 = vld [vmem:[%s2334_s4 + $0xa] sm:$0x3] }
 0x89f   : > { %1549 = vst [vmem:[%s1526_s19 + $0xc] sm:$0x3] %v1548_v21  ;;  %1551 = vst [vmem:[%s1526_s19 + $0x10] sm:$0x3] %v1550_v22  ;;  %v1554_v24 = vld [vmem:[%s2334_s4 + $0xc] sm:$0x3] }
 0x8a0   : > { %1553 = vst [vmem:[%s1526_s19 + $0x14] sm:$0x3] %v1552_v23  ;;  %v1556_v25 = vld [vmem:[%s2334_s4 + $0xe] sm:$0x3]  ;;  %1555 = vst [vmem:[%s1526_s19 + $0x18] sm:$0x3] %v1554_v24 }
 0x8a1   : > { %1557 = vst [vmem:[%s1526_s19 + $0x1c] sm:$0x3] %v1556_v25 }
 0x8a2 PF: > { %p9_p8 = scmp.ge.s32.totalorder %s2125_s13, 4   ;;  %s2721_s9 = smov %s2087_s10 }
 0x8a3   : > { %s2722_s10 = smov %s2133_s16  ;;  %s2723_s11 = smov %s2125_s13 }
 0x8a4   :  { %11 = sbr.rel (!%p9_p8) target bundleno = 2 (0x2), region = 118 }

</bundles_post_ra>
